<compile_context>
chip_gen: v7x
topology: tpu7x:2x2x1
jax: 0.10.0
libtpu: 0.0.40
codegen_flags: <defaults>
</compile_context>

<pallas_src>
import math
import functools

import jax
import jax.numpy as jnp
from jax.experimental import pallas as pl
from jax.experimental.pallas import tpu as pltpu


def _round_up(n, m):
    return (n + m - 1) // m * m


def _pad2(a, rows, cols):
    return jnp.pad(a, ((0, rows - a.shape[0]), (0, cols - a.shape[1])))


def _elu(x):
    # f32 ELU (alpha = 1), same as torch.nn.functional.elu
    return jnp.where(x > 0, x, jnp.exp(x) - 1.0)


def _encoder_kernel(n_hidden, hp, op, *refs):
    if n_hidden > 0:
        xc_ref, wall_ref, wh_ref, bh_ref, wmuh_ref, b0_ref, bmu_ref, mu_ref = refs
    else:
        xc_ref, wall_ref, wmuh_ref, b0_ref, bmu_ref, mu_ref = refs
        wh_ref = bh_ref = None

    xc = xc_ref[...]                                  # (Bt, DCP) bf16, [x | c | zero-pad]

    # Layer 0: cat([x, c]) @ W0 + b0.  The c rows live only in w_all's first column block.
    res = _elu(jnp.dot(xc, wall_ref[:, 0:hp],
                       preferred_element_type=jnp.float32) + b0_ref[...])

    # Hidden layers i = 1..n_hidden: cat([x, res]) @ Wi + bi.
    # x-part comes from the (zero-c-row) column block of w_all, h-part from wh_ref[i].
    for i in range(n_hidden):
        xpart = jnp.dot(xc, wall_ref[:, (i + 1) * hp:(i + 2) * hp],
                        preferred_element_type=jnp.float32)
        hpart = jnp.dot(res.astype(wh_ref.dtype), wh_ref[i],
                        preferred_element_type=jnp.float32)
        res = _elu(xpart + hpart + bh_ref[i])

    # mu head on latent = cat([x, res]).
    col0 = (n_hidden + 1) * hp
    mu = (jnp.dot(xc, wall_ref[:, col0:col0 + op], preferred_element_type=jnp.float32)
          + jnp.dot(res.astype(wmuh_ref.dtype), wmuh_ref[...],
                    preferred_element_type=jnp.float32)
          + bmu_ref[...])

    mu_ref[...] = mu


def pack_params(params, *, input_size, condition_size, n_hidden):
    """One-time weight packing (pad to 128-lane multiples, fuse x/c-side weights, cast to bf16).

    Call once outside the per-step path and pass the result to standard_vae_encoder_forward.
    """
    w0, b0, wx, wh, bh, wmux, wmuh, bmu = params
    din, dc = input_size, condition_size
    H = w0.shape[1]
    O = wmux.shape[1]

    DCP = _round_up(din + dc, 128)    # packed [x, c] lane width
    HP = _round_up(H, 128)
    OP = _round_up(O, 128)

    # Fused input-side weight: (DCP, (n_hidden+1)*HP + OP), every column block 128-aligned.
    #   block 0:            rows [0:din]=w0 x-part, rows [din:din+dc]=w0 c-part
    #   block 1..n_hidden:  rows [0:din]=wx[i], c rows zero (hidden layers see cat([x, res]))
    #   last block:         rows [0:din]=wmux, c rows zero
    blocks = [_pad2(w0, DCP, HP)]
    blocks += [_pad2(wx[i], DCP, HP) for i in range(n_hidden)]
    blocks += [_pad2(wmux, DCP, OP)]
    w_all = jnp.concatenate(blocks, axis=1).astype(jnp.bfloat16)

    wmuhp = _pad2(wmuh, HP, OP).astype(jnp.bfloat16)
    b0p = _pad2(b0, 1, HP).astype(jnp.float32)
    bmup = _pad2(bmu, 1, OP).astype(jnp.float32)

    if n_hidden > 0:
        whp = jnp.pad(wh, ((0, 0), (0, HP - H), (0, HP - H))).astype(jnp.bfloat16)  # (n, HP, HP)
        bhp = jnp.pad(bh, ((0, 0), (0, 0), (0, HP - H))).astype(jnp.float32)        # (n, 1, HP)
    else:
        whp = None
        bhp = None

    return (w_all, whp, bhp, wmuhp, b0p, bmup)


@functools.partial(jax.jit, static_argnames=("fix_var", "n_hidden", "batch_tile"))
def standard_vae_encoder_forward(normalized_obs, normalized_target, packed, eps,
                                 *, fix_var, n_hidden, batch_tile=512):
    """Returns (z, mu, zeros_like(mu)) like StandardVAEEncoder.forward.

    `packed` is the output of pack_params (weights pre-padded / pre-cast, done once).
    """
    x = normalized_target          # (B, Din)
    c = normalized_obs             # (B, Dc)
    B = x.shape[0]
    O = eps.shape[1]

    w_all, whp, bhp, wmuhp, b0p, bmup = packed
    DCP, WN = w_all.shape
    HP, OP = wmuhp.shape

    # Batch tiling: one big tile when B <= batch_tile (overhead-bound regime); keep Bt % 8 == 0.
    # For v7x two-TC sharding, pass batch_tile = round_up(ceil(B/2), 8) so the grid has 2 steps.
    Bt = min(_round_up(B, 8), batch_tile)
    BP = _round_up(B, Bt)
    n_bt = BP // Bt

    # Single packed activation operand [x | c], lane-padded, bf16 for the MXU.
    xc = _pad2(jnp.concatenate([x, c], axis=-1), BP, DCP).astype(jnp.bfloat16)

    kernel = functools.partial(_encoder_kernel, n_hidden, HP, OP)

    args = [xc, w_all]
    in_specs = [
        pl.BlockSpec((Bt, DCP), lambda b: (b, 0)),        # packed [x, c] tile
        pl.BlockSpec((DCP, WN), lambda b: (0, 0)),        # fused input-side weights (resident)
    ]
    if n_hidden > 0:
        n_w = whp.shape[0]
        args += [whp, bhp]
        in_specs += [
            pl.BlockSpec((n_w, HP, HP), lambda b: (0, 0, 0)),  # hidden-layer h-part weights
            pl.BlockSpec((n_w, 1, HP), lambda b: (0, 0, 0)),   # hidden biases
        ]
    args += [wmuhp, b0p, bmup]
    in_specs += [
        pl.BlockSpec((HP, OP), lambda b: (0, 0)),         # mu head h-part weight
        pl.BlockSpec((1, HP), lambda b: (0, 0)),          # b0
        pl.BlockSpec((1, OP), lambda b: (0, 0)),          # bmu
    ]

    # Advisory cost estimate for XLA's scheduler around this small custom call.
    flops = 2 * BP * (DCP * WN + n_hidden * HP * HP + HP * OP)
    transcendentals = BP * (n_hidden + 1) * HP
    bytes_accessed = sum(int(a.size) * a.dtype.itemsize for a in args) + BP * OP * 4

    mup = pl.pallas_call(
        kernel,
        out_shape=jax.ShapeDtypeStruct((BP, OP), jnp.float32),
        grid=(n_bt,),
        in_specs=in_specs,
        out_specs=pl.BlockSpec((Bt, OP), lambda b: (b, 0)),
        compiler_params=pltpu.CompilerParams(
            dimension_semantics=("parallel",)),           # batch axis -> both TCs on v7x
        cost_estimate=pl.CostEstimate(flops=flops,
                                      transcendentals=transcendentals,
                                      bytes_accessed=bytes_accessed),
    )(*args)

    # Reparameterize on the unpadded (B, O) arrays: std = exp(0.5 * 2*log(var)) = fix_var.
    mu = mup[:B, :O]
    z = mu + eps * jnp.float32(fix_var)
    return z, mu, jnp.zeros_like(mu)


def make_params(key, input_size, condition_size, hidden, output, n_hidden):
    """Xavier-uniform weights / zero biases, stored (in_features, out_features)."""
    def xavier(k, fan_in, fan_out):
        bound = math.sqrt(6.0 / (fan_in + fan_out))
        return jax.random.uniform(k, (fan_in, fan_out), jnp.float32, -bound, bound)

    keys = jax.random.split(key, 2 + n_hidden)
    w0 = xavier(keys[0], input_size + condition_size, hidden)
    b0 = jnp.zeros((1, hidden), jnp.float32)

    if n_hidden > 0:
        ws = [xavier(keys[1 + i], input_size + hidden, hidden) for i in range(n_hidden)]
        wx = jnp.stack([w[:input_size] for w in ws])       # (n, Din, H)
        wh = jnp.stack([w[input_size:] for w in ws])       # (n, H, H)
    else:
        wx = jnp.zeros((0, input_size, hidden), jnp.float32)
        wh = jnp.zeros((0, hidden, hidden), jnp.float32)
    bh = jnp.zeros((n_hidden, 1, hidden), jnp.float32)

    wmu = xavier(keys[1 + n_hidden], input_size + hidden, output)
    wmux, wmuh = wmu[:input_size], wmu[input_size:]
    bmu = jnp.zeros((1, output), jnp.float32)
    return (w0, b0, wx, wh, bh, wmux, wmuh, bmu)


def reference_forward(normalized_obs, normalized_target, params, eps, fix_var, n_hidden):
    """Pure-JAX f32 reference following the PyTorch module structure."""
    x, c = normalized_target, normalized_obs
    w0, b0, wx, wh, bh, wmux, wmuh, bmu = params
    res = _elu(jnp.concatenate([x, c], -1) @ w0 + b0)
    for i in range(n_hidden):
        w = jnp.concatenate([wx[i], wh[i]], 0)
        res = _elu(jnp.concatenate([x, res], -1) @ w + bh[i])
    mu = jnp.concatenate([x, res], -1) @ jnp.concatenate([wmux, wmuh], 0) + bmu
    z = mu + eps * fix_var
    return z, mu, jnp.zeros_like(mu)


if __name__ == "__main__":
    # Flat feature vectors, shapes consistent with the module; batch small enough that the whole
    # thing runs as a single grid step (overhead-bound regime, per the perf review).
    B = 256
    INPUT_SIZE = 32       # normalized_target feature dim
    COND_SIZE = 64        # normalized_obs feature dim
    HIDDEN = 64           # encoder_hidden_layer_size
    OUTPUT = 16           # latent_dim
    N_HIDDEN = 2          # encoder_hidden_layer_num
    FIX_VAR = 0.3         # fix_var (var is not None branch); encoder_activation = 'elu'

    key = jax.random.PRNGKey(0)
    k_obs, k_tgt, k_eps, k_par = jax.random.split(key, 4)
    normalized_obs = jax.random.normal(k_obs, (B, COND_SIZE), jnp.float32)
    normalized_target = jax.random.normal(k_tgt, (B, INPUT_SIZE), jnp.float32)
    eps = jax.random.normal(k_eps, (B, OUTPUT), jnp.float32)   # reparameterization noise

    params = make_params(k_par, INPUT_SIZE, COND_SIZE, HIDDEN, OUTPUT, N_HIDDEN)

    # One-time weight packing (outside the per-call path).
    packed = pack_params(params, input_size=INPUT_SIZE, condition_size=COND_SIZE,
                         n_hidden=N_HIDDEN)
    packed = jax.block_until_ready(packed)

    z, mu, logvar = standard_vae_encoder_forward(
        normalized_obs, normalized_target, packed, eps,
        fix_var=FIX_VAR, n_hidden=N_HIDDEN)
    jax.block_until_ready((z, mu, logvar))

    z_ref, mu_ref, _ = reference_forward(
        normalized_obs, normalized_target, params, eps, FIX_VAR, N_HIDDEN)

    assert z.shape == (B, OUTPUT) and mu.shape == (B, OUTPUT) and logvar.shape == (B, OUTPUT)
    # bf16 MXU operands with f32 accumulation -> compare against the f32 reference with a
    # bf16-appropriate tolerance.
    assert jnp.allclose(mu, mu_ref, atol=5e-2, rtol=5e-2), \
        f"mu max abs err {float(jnp.max(jnp.abs(mu - mu_ref)))}"
    assert jnp.allclose(z, z_ref, atol=5e-2, rtol=5e-2), \
        f"z max abs err {float(jnp.max(jnp.abs(z - z_ref)))}"
    assert jnp.all(logvar == 0)   # module's forward returns zeros_like(mu) as 3rd output

    print("KERNEL_OK")
</pallas_src>

<mosaic_0001>
module attributes {stable_mosaic.version = 11 : i64} {
  func.func @_encoder_kernel(%arg0: i32, %arg1: memref<256x128xbf16, #tpu.memory_space<vmem>>, %arg2: memref<128x512xbf16, #tpu.memory_space<vmem>>, %arg3: memref<2x128x128xbf16, #tpu.memory_space<vmem>>, %arg4: memref<2x1x128xf32, #tpu.memory_space<vmem>>, %arg5: memref<128x128xbf16, #tpu.memory_space<vmem>>, %arg6: memref<1x128xf32, #tpu.memory_space<vmem>>, %arg7: memref<1x128xf32, #tpu.memory_space<vmem>>, %arg8: memref<256x128xf32, #tpu.memory_space<vmem>>) attributes {dimension_semantics = [#tpu.dimension_semantics<parallel>], iteration_bounds = array<i64: 1>, scalar_prefetch = 0 : i64, scratch_operands = 0 : i64, tpu.core_type = #tpu.core_type<tc>, window_params = [{transform_indices = @transform_0, window_bounds = array<i64: 256, 128>}, {pipeline_mode = #tpu.pipeline_mode<synchronous>, transform_indices = @transform_1, window_bounds = array<i64: 128, 512>}, {pipeline_mode = #tpu.pipeline_mode<synchronous>, transform_indices = @transform_2, window_bounds = array<i64: 2, 128, 128>}, {pipeline_mode = #tpu.pipeline_mode<synchronous>, transform_indices = @transform_3, window_bounds = array<i64: 2, 1, 128>}, {pipeline_mode = #tpu.pipeline_mode<synchronous>, transform_indices = @transform_4, window_bounds = array<i64: 128, 128>}, {pipeline_mode = #tpu.pipeline_mode<synchronous>, transform_indices = @transform_5, window_bounds = array<i64: 1, 128>}, {pipeline_mode = #tpu.pipeline_mode<synchronous>, transform_indices = @transform_6, window_bounds = array<i64: 1, 128>}, {transform_indices = @transform_7, window_bounds = array<i64: 256, 128>}]} {
    %c0 = arith.constant 0 : index
    %c0_0 = arith.constant 0 : index
    %0 = vector.load %arg1[%c0, %c0_0] : memref<256x128xbf16, #tpu.memory_space<vmem>>, vector<256x128xbf16>
    %c0_1 = arith.constant 0 : index
    %c0_2 = arith.constant 0 : index
    %1 = vector.load %arg2[%c0_1, %c0_2] : memref<128x512xbf16, #tpu.memory_space<vmem>>, vector<128x128xbf16>
    %cst = arith.constant dense<0.000000e+00> : vector<256x128xf32>
    %2 = tpu.matmul %0, %1, %cst {dimension_numbers = #tpu.dot_dimension_numbers<[1], [0], [0], [1], [0, 0, 1, 1], [], []>} : vector<256x128xbf16>, vector<128x128xbf16>, vector<256x128xf32> -> vector<256x128xf32>
    %c0_3 = arith.constant 0 : index
    %c0_4 = arith.constant 0 : index
    %3 = vector.load %arg6[%c0_3, %c0_4] : memref<1x128xf32, #tpu.memory_space<vmem>>, vector<1x128xf32>
    %4 = vector.broadcast %3 : vector<1x128xf32> to vector<256x128xf32>
    %5 = arith.addf %2, %4 : vector<256x128xf32>
    %cst_5 = arith.constant 0.000000e+00 : f32
    %6 = vector.broadcast %cst_5 : f32 to vector<256x128xf32>
    %7 = arith.cmpf ogt, %5, %6 : vector<256x128xf32>
    %8 = math.exp %5 : vector<256x128xf32>
    %cst_6 = arith.constant 1.000000e+00 : f32
    %9 = vector.broadcast %cst_6 : f32 to vector<256x128xf32>
    %10 = arith.subf %8, %9 : vector<256x128xf32>
    %11 = arith.select %7, %5, %10 : vector<256x128xi1>, vector<256x128xf32>
    %c0_7 = arith.constant 0 : index
    %c128 = arith.constant 128 : index
    %12 = vector.load %arg2[%c0_7, %c128] : memref<128x512xbf16, #tpu.memory_space<vmem>>, vector<128x128xbf16>
    %cst_8 = arith.constant dense<0.000000e+00> : vector<256x128xf32>
    %13 = tpu.matmul %0, %12, %cst_8 {dimension_numbers = #tpu.dot_dimension_numbers<[1], [0], [0], [1], [0, 0, 1, 1], [], []>} : vector<256x128xbf16>, vector<128x128xbf16>, vector<256x128xf32> -> vector<256x128xf32>
    %14 = arith.truncf %11 : vector<256x128xf32> to vector<256x128xbf16>
    %c0_9 = arith.constant 0 : index
    %c0_10 = arith.constant 0 : index
    %c0_11 = arith.constant 0 : index
    %15 = vector.load %arg3[%c0_9, %c0_10, %c0_11] : memref<2x128x128xbf16, #tpu.memory_space<vmem>>, vector<1x128x128xbf16>
    %16 = vector.shape_cast %15 : vector<1x128x128xbf16> to vector<128x128xbf16>
    %cst_12 = arith.constant dense<0.000000e+00> : vector<256x128xf32>
    %17 = tpu.matmul %14, %16, %cst_12 {dimension_numbers = #tpu.dot_dimension_numbers<[1], [0], [0], [1], [0, 0, 1, 1], [], []>} : vector<256x128xbf16>, vector<128x128xbf16>, vector<256x128xf32> -> vector<256x128xf32>
    %18 = arith.addf %13, %17 : vector<256x128xf32>
    %c0_13 = arith.constant 0 : index
    %c0_14 = arith.constant 0 : index
    %c0_15 = arith.constant 0 : index
    %19 = vector.load %arg4[%c0_13, %c0_14, %c0_15] : memref<2x1x128xf32, #tpu.memory_space<vmem>>, vector<1x1x128xf32>
    %20 = vector.shape_cast %19 : vector<1x1x128xf32> to vector<1x128xf32>
    %21 = vector.broadcast %20 : vector<1x128xf32> to vector<256x128xf32>
    %22 = arith.addf %18, %21 : vector<256x128xf32>
    %cst_16 = arith.constant 0.000000e+00 : f32
    %23 = vector.broadcast %cst_16 : f32 to vector<256x128xf32>
    %24 = arith.cmpf ogt, %22, %23 : vector<256x128xf32>
    %25 = math.exp %22 : vector<256x128xf32>
    %cst_17 = arith.constant 1.000000e+00 : f32
    %26 = vector.broadcast %cst_17 : f32 to vector<256x128xf32>
    %27 = arith.subf %25, %26 : vector<256x128xf32>
    %28 = arith.select %24, %22, %27 : vector<256x128xi1>, vector<256x128xf32>
    %c0_18 = arith.constant 0 : index
    %c256 = arith.constant 256 : index
    %29 = vector.load %arg2[%c0_18, %c256] : memref<128x512xbf16, #tpu.memory_space<vmem>>, vector<128x128xbf16>
    %cst_19 = arith.constant dense<0.000000e+00> : vector<256x128xf32>
    %30 = tpu.matmul %0, %29, %cst_19 {dimension_numbers = #tpu.dot_dimension_numbers<[1], [0], [0], [1], [0, 0, 1, 1], [], []>} : vector<256x128xbf16>, vector<128x128xbf16>, vector<256x128xf32> -> vector<256x128xf32>
    %31 = arith.truncf %28 : vector<256x128xf32> to vector<256x128xbf16>
    %c1 = arith.constant 1 : index
    %c0_20 = arith.constant 0 : index
    %c0_21 = arith.constant 0 : index
    %32 = vector.load %arg3[%c1, %c0_20, %c0_21] : memref<2x128x128xbf16, #tpu.memory_space<vmem>>, vector<1x128x128xbf16>
    %33 = vector.shape_cast %32 : vector<1x128x128xbf16> to vector<128x128xbf16>
    %cst_22 = arith.constant dense<0.000000e+00> : vector<256x128xf32>
    %34 = tpu.matmul %31, %33, %cst_22 {dimension_numbers = #tpu.dot_dimension_numbers<[1], [0], [0], [1], [0, 0, 1, 1], [], []>} : vector<256x128xbf16>, vector<128x128xbf16>, vector<256x128xf32> -> vector<256x128xf32>
    %35 = arith.addf %30, %34 : vector<256x128xf32>
    %c1_23 = arith.constant 1 : index
    %c0_24 = arith.constant 0 : index
    %c0_25 = arith.constant 0 : index
    %36 = vector.load %arg4[%c1_23, %c0_24, %c0_25] : memref<2x1x128xf32, #tpu.memory_space<vmem>>, vector<1x1x128xf32>
    %37 = vector.shape_cast %36 : vector<1x1x128xf32> to vector<1x128xf32>
    %38 = vector.broadcast %37 : vector<1x128xf32> to vector<256x128xf32>
    %39 = arith.addf %35, %38 : vector<256x128xf32>
    %cst_26 = arith.constant 0.000000e+00 : f32
    %40 = vector.broadcast %cst_26 : f32 to vector<256x128xf32>
    %41 = arith.cmpf ogt, %39, %40 : vector<256x128xf32>
    %42 = math.exp %39 : vector<256x128xf32>
    %cst_27 = arith.constant 1.000000e+00 : f32
    %43 = vector.broadcast %cst_27 : f32 to vector<256x128xf32>
    %44 = arith.subf %42, %43 : vector<256x128xf32>
    %45 = arith.select %41, %39, %44 : vector<256x128xi1>, vector<256x128xf32>
    %c0_28 = arith.constant 0 : index
    %c384 = arith.constant 384 : index
    %46 = vector.load %arg2[%c0_28, %c384] : memref<128x512xbf16, #tpu.memory_space<vmem>>, vector<128x128xbf16>
    %cst_29 = arith.constant dense<0.000000e+00> : vector<256x128xf32>
    %47 = tpu.matmul %0, %46, %cst_29 {dimension_numbers = #tpu.dot_dimension_numbers<[1], [0], [0], [1], [0, 0, 1, 1], [], []>} : vector<256x128xbf16>, vector<128x128xbf16>, vector<256x128xf32> -> vector<256x128xf32>
    %48 = arith.truncf %45 : vector<256x128xf32> to vector<256x128xbf16>
    %c0_30 = arith.constant 0 : index
    %c0_31 = arith.constant 0 : index
    %49 = vector.load %arg5[%c0_30, %c0_31] : memref<128x128xbf16, #tpu.memory_space<vmem>>, vector<128x128xbf16>
    %cst_32 = arith.constant dense<0.000000e+00> : vector<256x128xf32>
    %50 = tpu.matmul %48, %49, %cst_32 {dimension_numbers = #tpu.dot_dimension_numbers<[1], [0], [0], [1], [0, 0, 1, 1], [], []>} : vector<256x128xbf16>, vector<128x128xbf16>, vector<256x128xf32> -> vector<256x128xf32>
    %51 = arith.addf %47, %50 : vector<256x128xf32>
    %c0_33 = arith.constant 0 : index
    %c0_34 = arith.constant 0 : index
    %52 = vector.load %arg7[%c0_33, %c0_34] : memref<1x128xf32, #tpu.memory_space<vmem>>, vector<1x128xf32>
    %53 = vector.broadcast %52 : vector<1x128xf32> to vector<256x128xf32>
    %54 = arith.addf %51, %53 : vector<256x128xf32>
    %c0_35 = arith.constant 0 : index
    %c0_36 = arith.constant 0 : index
    %55 = vector.load %arg8[%c0_35, %c0_36] : memref<256x128xf32, #tpu.memory_space<vmem>>, vector<256x128xf32>
    tpu.vector_store %arg8[%c0_35, %c0_36], %54 {strides = array<i32>} : memref<256x128xf32, #tpu.memory_space<vmem>>, vector<256x128xf32>,
    return
  }
  func.func @transform_0(%arg0: i32) -> (i32, i32) {
    %c0_i32 = arith.constant 0 : i32
    %c0_i32_0 = arith.constant 0 : i32
    return %arg0, %c0_i32 : i32, i32
  }
  func.func @transform_1(%arg0: i32) -> (i32, i32) {
    %c0_i32 = arith.constant 0 : i32
    %c0_i32_0 = arith.constant 0 : i32
    %c0_i32_1 = arith.constant 0 : i32
    return %c0_i32, %c0_i32_0 : i32, i32
  }
  func.func @transform_2(%arg0: i32) -> (i32, i32, i32) {
    %c0_i32 = arith.constant 0 : i32
    %c0_i32_0 = arith.constant 0 : i32
    %c0_i32_1 = arith.constant 0 : i32
    %c0_i32_2 = arith.constant 0 : i32
    return %c0_i32, %c0_i32_0, %c0_i32_1 : i32, i32, i32
  }
  func.func @transform_3(%arg0: i32) -> (i32, i32, i32) {
    %c0_i32 = arith.constant 0 : i32
    %c0_i32_0 = arith.constant 0 : i32
    %c0_i32_1 = arith.constant 0 : i32
    %c0_i32_2 = arith.constant 0 : i32
    return %c0_i32, %c0_i32_0, %c0_i32_1 : i32, i32, i32
  }
  func.func @transform_4(%arg0: i32) -> (i32, i32) {
    %c0_i32 = arith.constant 0 : i32
    %c0_i32_0 = arith.constant 0 : i32
    %c0_i32_1 = arith.constant 0 : i32
    return %c0_i32, %c0_i32_0 : i32, i32
  }
  func.func @transform_5(%arg0: i32) -> (i32, i32) {
    %c0_i32 = arith.constant 0 : i32
    %c0_i32_0 = arith.constant 0 : i32
    %c0_i32_1 = arith.constant 0 : i32
    return %c0_i32, %c0_i32_0 : i32, i32
  }
  func.func @transform_6(%arg0: i32) -> (i32, i32) {
    %c0_i32 = arith.constant 0 : i32
    %c0_i32_0 = arith.constant 0 : i32
    %c0_i32_1 = arith.constant 0 : i32
    return %c0_i32, %c0_i32_0 : i32, i32
  }
  func.func @transform_7(%arg0: i32) -> (i32, i32) {
    %c0_i32 = arith.constant 0 : i32
    %c0_i32_0 = arith.constant 0 : i32
    return %arg0, %c0_i32 : i32, i32
  }
}

</mosaic_0001>

<bundles_post_ra>
// kernel: standard_vae_encoder_forward.1
= control target key start
LH: loop header
LB: loop body
LE: loop exit
PB: predicated region body
PF: predicated region fallthrough
CT: control target
= control target key end

     0   :  { %s4645_s1 = inlined_call_operand.vmem [shape: bf16[128,512], index: 1, kind: input, shape index: {}]   ;;  %s4646_s0 = inlined_call_operand.vmem [shape: bf16[256,128], index: 0, kind: input, shape index: {}]   ;;  %s4647_s2 = inlined_call_operand.vmem [shape: bf16[2,128,128], index: 2, kind: input, shape index: {}]   ;;  %s4648_s5 = inlined_call_operand.vmem [shape: f32[1,128], index: 5, kind: input, shape index: {}]   ;;  %s4649_s3 = inlined_call_operand.vmem [shape: f32[2,1,128], index: 3, kind: input, shape index: {}]   ;;  %s4650_s4 = inlined_call_operand.vmem [shape: bf16[128,128], index: 4, kind: input, shape index: {}]   ;;  %s4651_s6 = inlined_call_operand.vmem [shape: f32[1,128], index: 6, kind: input, shape index: {}]   ;;  %s4652_s7 = inlined_call_operand.vmem [shape: f32[256,128], index: 7, kind: output, shape index: {}]  }
   0x1   :  { %v3225_v0 = vld [vmem:[%s4645_s1] ss:$16 sps:$4 sm:$0xff]   ;;  %v3250_v10 = vld [vmem:[%s4647_s2 + $0x8] sm:$0xff]   ;;  %v3596_v13 = vld [vmem:[%s4646_s0 + $0x18] sm:$0xff]  }
   0x2   :  { %v3226_v1 = vld [vmem:[%s4645_s1 + $0x20] ss:$16 sps:$4 sm:$0xff]   ;;  %2777 = vmatprep.subr.bf16.mxu0 %v3225_v0  ;;  %v3584_v11 = vld [vmem:[%s4646_s0 + $0x8] sm:$0xff]   ;;  %v3620_v17 = vld [vmem:[%s4646_s0 + $0x38] sm:$0xff]  }
   0x3   :  { %2778 = vmatpush3.bf16.msra.mxu0 %v3225_v0  ;;  %v3227_v2 = vld [vmem:[%s4645_s1 + $0x40] ss:$16 sps:$4 sm:$0xff]   ;;  %v3608_v15 = vld [vmem:[%s4646_s0 + $0x28] sm:$0xff]   ;;  %v3644_v21 = vld [vmem:[%s4646_s0 + $0x58] sm:$0xff]  }
   0x4   :  { %2779 = vmatprep.subr.bf16.mxu0 %v3226_v1  ;;  %v3228_v3 = vld [vmem:[%s4645_s1 + $0x60] ss:$16 sps:$4 sm:$0xff]   ;;  %v3632_v19 = vld [vmem:[%s4646_s0 + $0x48] sm:$0xff]   ;;  %v3668_v25 = vld [vmem:[%s4646_s0 + $0x78] sm:$0xff]  }
   0x5   :  { %v3560_v4 = vld [vmem:[%s4646_s0] sm:$0xff]   ;;  %v3589_v12 = vld [vmem:[%s4646_s0 + $0x10] sm:$0xff]   ;;  %v3656_v23 = vld [vmem:[%s4646_s0 + $0x68] sm:$0xff]  }
   0x6   :  { %2793 = vmatprep.mubr.bf16.mxu0 %v3560_v4  ;;  %v3229_v5 = vld [vmem:[%s4645_s1 + $0x80] ss:$16 sps:$4 sm:$0xff]   ;;  %v3252_v27 = vld [vmem:[%s4647_s2 + $0x18] sm:$0xff]   ;;  %v3254_v29 = vld [vmem:[%s4647_s2 + $0x28] sm:$0xff]  }
   0x7   :  { %2780 = vmatpush3.bf16.msra.mxu0 %v3226_v1  ;;  %v3230_v6 = vld [vmem:[%s4645_s1 + $0xa0] ss:$16 sps:$4 sm:$0xff]   ;;  %v3256_v31 = vld [vmem:[%s4647_s2 + $0x38] sm:$0xff]   ;;  %v3692_v32 = vld [vmem:[%s4645_s1 + $0x4] ss:$16 sps:$4 sm:$0xff]  }
   0x8   :  { %2781 = vmatprep.subr.bf16.mxu0 %v3227_v2  ;;  %v3231_v7 = vld [vmem:[%s4645_s1 + $0xc0] ss:$16 sps:$4 sm:$0xff]  }
   0x9   :  { %v3232_v8 = vld [vmem:[%s4645_s1 + $0xe0] ss:$16 sps:$4 sm:$0xff]  }
   0xa   :  { %v3249_v9 = vld [vmem:[%s4647_s2] sm:$0xff]   ;;  %v3613_v16 = vld [vmem:[%s4646_s0 + $0x30] sm:$0xff]  }
   0xb   :  { %2782 = vmatpush3.bf16.msra.mxu0 %v3227_v2  ;;  %3113 = vmatprep.subr.bf16.mxu1 %v3249_v9  ;;  %v3601_v14 = vld [vmem:[%s4646_s0 + $0x20] sm:$0xff]   ;;  %v3637_v20 = vld [vmem:[%s4646_s0 + $0x50] sm:$0xff]  }
   0xc   :  { %2783 = vmatprep.subr.bf16.mxu0 %v3228_v3  ;;  %3121 = vmatpush3.bf16.msra.mxu1 %v3249_v9  ;;  %v3625_v18 = vld [vmem:[%s4646_s0 + $0x40] sm:$0xff]   ;;  %v3661_v24 = vld [vmem:[%s4646_s0 + $0x70] sm:$0xff]  }
   0xd   :  { %3114 = vmatprep.subr.bf16.mxu1 %v3250_v10  ;;  %v3649_v22 = vld [vmem:[%s4646_s0 + $0x60] sm:$0xff]   ;;  %v3251_v26 = vld [vmem:[%s4647_s2 + $0x10] sm:$0xff]  }
   0xe   :  { %v3253_v28 = vld [vmem:[%s4647_s2 + $0x20] sm:$0xff]   ;;  %v3255_v30 = vld [vmem:[%s4647_s2 + $0x30] sm:$0xff]  }
   0xf   :  { %2784 = vmatpush3.bf16.msra.mxu0 %v3228_v3  ;;  %v3698_v33 = vld [vmem:[%s4648_s5] ss:$0 sm:$0xff] }
  0x10   :  { %2785 = vmatprep.subr.bf16.mxu0 %v3229_v5  ;;  %3122 = vmatpush3.bf16.msra.mxu1 %v3250_v10 }
  0x11   :  { %3115 = vmatprep.subr.bf16.mxu1 %v3251_v26 }
  0x13   :  { %2786 = vmatpush3.bf16.msra.mxu0 %v3229_v5 }
  0x14   :  { %2787 = vmatprep.subr.bf16.mxu0 %v3230_v6  ;;  %3123 = vmatpush3.bf16.msra.mxu1 %v3251_v26 }
  0x15   :  { %3116 = vmatprep.subr.bf16.mxu1 %v3252_v27 }
  0x17   :  { %2788 = vmatpush3.bf16.msra.mxu0 %v3230_v6 }
  0x18   :  { %2789 = vmatprep.subr.bf16.mxu0 %v3231_v7  ;;  %3124 = vmatpush3.bf16.msra.mxu1 %v3252_v27 }
  0x19   :  { %3117 = vmatprep.subr.bf16.mxu1 %v3253_v28 }
  0x1b   :  { %2790 = vmatpush3.bf16.msra.mxu0 %v3231_v7 }
  0x1c   :  { %2791 = vmatprep.subr.bf16.mxu0 %v3232_v8  ;;  %3125 = vmatpush3.bf16.msra.mxu1 %v3253_v28 }
  0x1d   :  { %3118 = vmatprep.subr.bf16.mxu1 %v3254_v29 }
  0x1f   :  { %2792 = vmatpush3.bf16.msra.mxu0 %v3232_v8 }
  0x20   :  { %2825 = vmatprep.subr.bf16.mxu0 %v3249_v9  ;;  %3126 = vmatpush3.bf16.msra.mxu1 %v3254_v29 }
  0x21   :  { %3119 = vmatprep.subr.bf16.mxu1 %v3255_v30 }
  0x22   :  { %2794 = vmatmul.mubr.bf16.vlgmr.msra.gmra.mrb[0].mxu0 %v3584_v11 }
  0x23   :  { %2797 = vmatprep.mubr.bf16.mxu0 %v3589_v12  ;;  %2826 = vmatpush3.bf16.msra.mxu0 %v3249_v9 }
  0x24   :  { %2827 = vmatprep.subr.bf16.mxu0 %v3250_v10  ;;  %3127 = vmatpush3.bf16.msra.mxu1 %v3255_v30 }
  0x25   :  { %3120 = vmatprep.subr.bf16.mxu1 %v3256_v31 }
  0x27   :  { %2828 = vmatpush3.bf16.msra.mxu0 %v3250_v10 }
  0x28   :  { %2829 = vmatprep.subr.bf16.mxu0 %v3251_v26  ;;  %3128 = vmatpush3.bf16.msra.mxu1 %v3256_v31 }
  0x29   :  { %2873 = vmatprep.subr.bf16.mxu1 %v3692_v32 }
  0x2a   :  { %2798 = vmatmul.mubr.bf16.gmra.mrb[4].mxu0 %v3596_v13 }
  0x2b   :  { %2801 = vmatprep.mubr.bf16.mxu0 %v3601_v14  ;;  %2830 = vmatpush3.bf16.msra.mxu0 %v3251_v26 }
  0x2c   :  { %2831 = vmatprep.subr.bf16.mxu0 %v3252_v27 }
  0x2f   :  { %2832 = vmatpush3.bf16.msra.mxu0 %v3252_v27 }
  0x30   :  { %2833 = vmatprep.subr.bf16.mxu0 %v3253_v28 }
  0x32   :  { %2802 = vmatmul.mubr.bf16.gmra.mrb[8].mxu0 %v3608_v15 }
  0x33   :  { %2805 = vmatprep.mubr.bf16.mxu0 %v3613_v16  ;;  %2834 = vmatpush3.bf16.msra.mxu0 %v3253_v28 }
  0x34   :  { %2835 = vmatprep.subr.bf16.mxu0 %v3254_v29 }
  0x37   :  { %2836 = vmatpush3.bf16.msra.mxu0 %v3254_v29 }
  0x38   :  { %2837 = vmatprep.subr.bf16.mxu0 %v3255_v30 }
  0x3a   :  { %2806 = vmatmul.mubr.bf16.gmra.mrb[12].mxu0 %v3620_v17 }
  0x3b   :  { %2809 = vmatprep.mubr.bf16.mxu0 %v3625_v18  ;;  %2838 = vmatpush3.bf16.msra.mxu0 %v3255_v30 }
  0x3c   :  { %2839 = vmatprep.subr.bf16.mxu0 %v3256_v31 }
  0x3f   :  { %2840 = vmatpush3.bf16.msra.mxu0 %v3256_v31 }
  0x42   :  { %2810 = vmatmul.mubr.bf16.gmra.mrb[16].mxu0 %v3632_v19 }
  0x43   :  { %2813 = vmatprep.mubr.bf16.mxu0 %v3637_v20 }
  0x4a   :  { %2814 = vmatmul.mubr.bf16.gmra.mrb[20].mxu0 %v3644_v21 }
  0x4b   :  { %2817 = vmatprep.mubr.bf16.mxu0 %v3649_v22 }
  0x52   :  { %2818 = vmatmul.mubr.bf16.gmra.mrb[24].mxu0 %v3656_v23 }
  0x53   :  { %2821 = vmatprep.mubr.bf16.mxu0 %v3661_v24 }
  0x5a   :  { %2822 = vmatmul.mubr.bf16.gmra.mrb[28].mxu0 %v3668_v25 }
  0xf5   :  { %v2795_v34 = vpop.f32.mrb[0].mxu0 }
  0xf6   :  { %v269_v35 = vadd.f32 %v2795_v34, %v3698_v33  ;;  %v260_v36 = vpop.f32.mrb[1].mxu0 }
  0xf7   :  { %v261_v37 = vadd.f32 %v3698_v33, %v260_v36  ;;  %v2796_v38 = vpop.f32.mrb[2].mxu0 }
  0xf8   :  { %v423_v39 = vmul.f32 1.442695, %v269_v35  ;;  %v272_v40 = vadd.f32 %v2796_v38, %v3698_v33  ;;  %v263_v41 = vpop.f32.mrb[3].mxu0  ;;  %vm389_vm0 = vcmp.gt.f32.partialorder %v269_v35, 0.0 }
  0xf9   :  { %v419_v42 = vmul.f32 1.442695, %v261_v37  ;;  %v264_v43 = vadd.f32 %v3698_v33, %v263_v41  ;;  %vm387_vm2 = vcmp.gt.f32.partialorder %v261_v37, 0.0 }
  0xfa   :  { %3297 = vpow2.f32 %v423_v39  ;;  %v425_v44 = vmul.f32 1.442695, %v272_v40  ;;  %vm390_vm1 = vcmp.gt.f32.partialorder %v272_v40, 0.0 }
  0xfb   :  { %3299 = vpow2.f32 %v419_v42  ;;  %v421_v45 = vmul.f32 1.442695, %v264_v43  ;;  %vm388_vm3 = vcmp.gt.f32.partialorder %v264_v43, 0.0 }
  0xfc   :  { %3301 = vpow2.f32 %v425_v44 }
  0xfd   :  { %3303 = vpow2.f32 %v421_v45  ;;  %v2799_v46 = vpop.f32.mrb[4].mxu0 }
  0xfe   :  { %v3705_v47 = vadd.f32 %v2799_v46, %v3698_v33  ;;  %v276_v48 = vpop.f32.mrb[5].mxu0 }
  0xff   :  { %v3708_v49 = vadd.f32 %v3698_v33, %v276_v48  ;;  %v2800_v50 = vpop.f32.mrb[6].mxu0 }
 0x100   :  { %v431_v51 = vmul.f32 1.442695, %v3705_v47  ;;  %v3712_v52 = vadd.f32 %v2800_v50, %v3698_v33  ;;  %v279_v53 = vpop.f32.mrb[7].mxu0  ;;  %vm393_vm4 = vcmp.gt.f32.partialorder %v3705_v47, 0.0 }
 0x101   :  { %v427_v54 = vmul.f32 1.442695, %v3708_v49  ;;  %v3716_v55 = vadd.f32 %v3698_v33, %v279_v53  ;;  %vm391_vm5 = vcmp.gt.f32.partialorder %v3708_v49, 0.0 }
 0x102   :  { %3305 = vpow2.f32 %v431_v51  ;;  %v433_v56 = vmul.f32 1.442695, %v3712_v52  ;;  %vm394_vm7 = vcmp.gt.f32.partialorder %v3712_v52, 0.0 }
 0x103   :  { %3307 = vpow2.f32 %v427_v54  ;;  %v429_v57 = vmul.f32 1.442695, %v3716_v55  ;;  %vm392_vm6 = vcmp.gt.f32.partialorder %v3716_v55, 0.0 }
 0x104   :  { %v3298_v58 = vpop.eup %3297  ;;  %3309 = vpow2.f32 %v433_v56 }
 0x105   :  { %v3300_v59 = vpop.eup %3299  ;;  %v2447_v60 = vadd.f32 -1.0, %v3298_v58  ;;  %3311 = vpow2.f32 %v429_v57  ;;  %v2803_v61 = vpop.f32.mrb[8].mxu0 }
 0x106   :  { %v3302_v62 = vpop.eup %3301  ;;  %v3721_v63 = vadd.f32 %v2803_v61, %v3698_v33  ;;  %v292_v0 = vpop.f32.mrb[9].mxu0  ;;  %v2445_v6 = vadd.f32 -1.0, %v3300_v59 }
 0x107   :  { %v3304_v1 = vpop.eup %3303  ;;  %v2448_v2 = vadd.f32 -1.0, %v3302_v62  ;;  %v3724_v3 = vadd.f32 %v3698_v33, %v292_v0  ;;  %v2804_v5 = vpop.f32.mrb[10].mxu0  ;;  %v517_v26 = vsel %vm389_vm0, %v269_v35, %v2447_v60 }
 0x108   :  { %v2446_v7 = vadd.f32 -1.0, %v3304_v1  ;;  %v439_v8 = vmul.f32 1.442695, %v3721_v63  ;;  %v3728_v9 = vadd.f32 %v2804_v5, %v3698_v33  ;;  %v295_v10 = vpop.f32.mrb[11].mxu0  ;;  %v515_v38 = vsel %vm387_vm2, %v261_v37, %v2445_v6 }
 0x109   :  { %v518_v27 = vsel %vm390_vm1, %v272_v40, %v2448_v2  ;;  %v435_v28 = vmul.f32 1.442695, %v3724_v3  ;;  %v3732_v29 = vadd.f32 %v3698_v33, %v295_v10  ;;  %vm397_vm8 = vcmp.gt.f32.partialorder %v3721_v63, 0.0 }
 0x10a   :  { %v564_v30 = vpack.c.bf16 %v518_v27, %v517_v26  ;;  %3313 = vpow2.f32 %v439_v8  ;;  %v441_v31 = vmul.f32 1.442695, %v3728_v9  ;;  %v516_v39 = vsel %vm388_vm3, %v264_v43, %v2446_v7 }
 0x10b   :  { %3315 = vpow2.f32 %v435_v28  ;;  %v437_v34 = vmul.f32 1.442695, %v3732_v29  ;;  %v563_v41 = vpack.c.bf16 %v516_v39, %v515_v38  ;;  %vm395_vm9 = vcmp.gt.f32.partialorder %v3724_v3, 0.0 }
 0x10c   :  { %v3306_v36 = vpop.eup %3305  ;;  %3317 = vpow2.f32 %v441_v31  ;;  %vm398_vm10 = vcmp.gt.f32.partialorder %v3728_v9, 0.0  ;;  %vm396_vm11 = vcmp.gt.f32.partialorder %v3732_v29, 0.0 }
 0x10d   :  { %v3308_v35 = vpop.eup %3307  ;;  %3319 = vpow2.f32 %v437_v34  ;;  %v2807_v40 = vpop.f32.mrb[12].mxu0  ;;  %v2451_v50 = vadd.f32 -1.0, %v3306_v36  ;;  %2841 = vmatprep.mubr.bf16.mxu0 %v563_v41 }
 0x10e   :  { %v3310_v42 = vpop.eup %3309  ;;  %v2449_v44 = vadd.f32 -1.0, %v3308_v35  ;;  %v3737_v45 = vadd.f32 %v2807_v40, %v3698_v33  ;;  %v308_v46 = vpop.f32.mrb[13].mxu0  ;;  %2842 = vmatmul.mubr.bf16.vlgmr.msra.gmra.mrb[32].mxu0 %v564_v30 }
 0x10f   :  { %v3312_v48 = vpop.eup %3311  ;;  %v3741_v51 = vadd.f32 %v3698_v33, %v308_v46  ;;  %v2808_v37 = vpop.f32.mrb[14].mxu0  ;;  %v2452_v43 = vadd.f32 -1.0, %v3310_v42  ;;  %v521_v5 = vsel %vm393_vm4, %v3705_v47, %v2451_v50 }
 0x110   :  { %v2450_v53 = vadd.f32 -1.0, %v3312_v48  ;;  %v447_v54 = vmul.f32 1.442695, %v3737_v45  ;;  %v3745_v56 = vadd.f32 %v2808_v37, %v3698_v33  ;;  %v311_v57 = vpop.f32.mrb[15].mxu0  ;;  %v519_v61 = vsel %vm391_vm5, %v3708_v49, %v2449_v44 }
 0x111   :  { %v443_v58 = vmul.f32 1.442695, %v3741_v51  ;;  %v3751_v59 = vadd.f32 %v3698_v33, %v311_v57  ;;  %v522_v6 = vsel %vm394_vm7, %v3712_v52, %v2452_v43  ;;  %vm401_vm12 = vcmp.gt.f32.partialorder %v3737_v45, 0.0 }
 0x112   :  { %3321 = vpow2.f32 %v447_v54  ;;  %v449_v60 = vmul.f32 1.442695, %v3745_v56  ;;  %v520_v62 = vsel %vm392_vm6, %v3716_v55, %v2450_v53  ;;  %v566_v55 = vpack.c.bf16 %v522_v6, %v521_v5 }
 0x113   :  { %3323 = vpow2.f32 %v443_v58  ;;  %v445_v0 = vmul.f32 1.442695, %v3751_v59  ;;  %v565_v1 = vpack.c.bf16 %v520_v62, %v519_v61  ;;  %vm399_vm13 = vcmp.gt.f32.partialorder %v3741_v51, 0.0 }
 0x114   :  { %v3314_v2 = vpop.eup %3313  ;;  %3325 = vpow2.f32 %v449_v60  ;;  %vm400_vm14 = vcmp.gt.f32.partialorder %v3751_v59, 0.0  ;;  %vm402_vm15 = vcmp.gt.f32.partialorder %v3745_v56, 0.0 }
 0x115   :  { %v3316_v7 = vpop.eup %3315  ;;  %v2455_v8 = vadd.f32 -1.0, %v3314_v2  ;;  %3327 = vpow2.f32 %v445_v0  ;;  %v2811_v49 = vpop.f32.mrb[16].mxu0  ;;  %2845 = vmatprep.mubr.bf16.mxu0 %v565_v1 }
 0x116   :  { %v3318_v10 = vpop.eup %3317  ;;  %v2453_v26 = vadd.f32 -1.0, %v3316_v7  ;;  %v3764_v27 = vadd.f32 %v2811_v49, %v3698_v33  ;;  %v324_v28 = vpop.f32.mrb[17].mxu0  ;;  %2846 = vmatmul.mubr.bf16.gmra.mrb[36].mxu0 %v566_v55 }
 0x117   :  { %v3320_v30 = vpop.eup %3319  ;;  %v2456_v47 = vadd.f32 -1.0, %v3318_v10  ;;  %v3769_v52 = vadd.f32 %v3698_v33, %v324_v28  ;;  %v2812_v31 = vpop.f32.mrb[18].mxu0  ;;  %v525_v41 = vsel %vm397_vm8, %v3721_v63, %v2455_v8 }
 0x118   :  { %v2454_v34 = vadd.f32 -1.0, %v3320_v30  ;;  %v455_v36 = vmul.f32 1.442695, %v3764_v27  ;;  %v3774_v38 = vadd.f32 %v2812_v31, %v3698_v33  ;;  %v327_v39 = vpop.f32.mrb[19].mxu0  ;;  %v523_v46 = vsel %vm395_vm9, %v3724_v3, %v2453_v26 }
 0x119   :  { %v451_v35 = vmul.f32 1.442695, %v3769_v52  ;;  %v3778_v40 = vadd.f32 %v3698_v33, %v327_v39  ;;  %v526_v42 = vsel %vm398_vm10, %v3728_v9, %v2456_v47  ;;  %vm405_vm0 = vcmp.gt.f32.partialorder %v3764_v27, 0.0 }
 0x11a   :  { %3329 = vpow2.f32 %v455_v36  ;;  %v457_v44 = vmul.f32 1.442695, %v3774_v38  ;;  %v524_v48 = vsel %vm396_vm11, %v3732_v29, %v2454_v34  ;;  %v568_v43 = vpack.c.bf16 %v526_v42, %v525_v41 }
 0x11b   :  { %3331 = vpow2.f32 %v451_v35  ;;  %v453_v50 = vmul.f32 1.442695, %v3778_v40  ;;  %v567_v37 = vpack.c.bf16 %v524_v48, %v523_v46  ;;  %vm403_vm1 = vcmp.gt.f32.partialorder %v3769_v52, 0.0 }
 0x11c   :  { %v3322_v53 = vpop.eup %3321  ;;  %3333 = vpow2.f32 %v457_v44  ;;  %vm404_vm2 = vcmp.gt.f32.partialorder %v3778_v40, 0.0  ;;  %vm406_vm3 = vcmp.gt.f32.partialorder %v3774_v38, 0.0 }
 0x11d   :  { %v3324_v54 = vpop.eup %3323  ;;  %3335 = vpow2.f32 %v453_v50  ;;  %v2815_v63 = vpop.f32.mrb[20].mxu0  ;;  %2849 = vmatprep.mubr.bf16.mxu0 %v567_v37  ;;  %v2459_v29 = vadd.f32 -1.0, %v3322_v53 }
 0x11e   :  { %v3326_v9 = vpop.eup %3325  ;;  %v2457_v57 = vadd.f32 -1.0, %v3324_v54  ;;  %v3791_v58 = vadd.f32 %v2815_v63, %v3698_v33  ;;  %v340_v60 = vpop.f32.mrb[21].mxu0  ;;  %2850 = vmatmul.mubr.bf16.gmra.mrb[40].mxu0 %v568_v43 }
 0x11f   :  { %v3328_v3 = vpop.eup %3327  ;;  %v3795_v61 = vadd.f32 %v3698_v33, %v340_v60  ;;  %v2816_v62 = vpop.f32.mrb[22].mxu0  ;;  %v2460_v0 = vadd.f32 -1.0, %v3326_v9  ;;  %v529_v47 = vsel %vm401_vm12, %v3737_v45, %v2459_v29 }
 0x120   :  { %v2458_v1 = vadd.f32 -1.0, %v3328_v3  ;;  %v463_v2 = vmul.f32 1.442695, %v3791_v58  ;;  %v3799_v5 = vadd.f32 %v2816_v62, %v3698_v33  ;;  %v343_v6 = vpop.f32.mrb[23].mxu0  ;;  %v527_v55 = vsel %vm399_vm13, %v3741_v51, %v2457_v57 }
 0x121   :  { %v459_v7 = vmul.f32 1.442695, %v3795_v61  ;;  %v3805_v8 = vadd.f32 %v3698_v33, %v343_v6  ;;  %v530_v31 = vsel %vm402_vm15, %v3745_v56, %v2460_v0  ;;  %vm409_vm4 = vcmp.gt.f32.partialorder %v3791_v58, 0.0 }
 0x122   :  { %3337 = vpow2.f32 %v463_v2  ;;  %v465_v49 = vmul.f32 1.442695, %v3799_v5  ;;  %v528_v10 = vsel %vm400_vm14, %v3751_v59, %v2458_v1  ;;  %v570_v51 = vpack.c.bf16 %v530_v31, %v529_v47 }
 0x123   :  { %3339 = vpow2.f32 %v459_v7  ;;  %v461_v26 = vmul.f32 1.442695, %v3805_v8  ;;  %v569_v28 = vpack.c.bf16 %v528_v10, %v527_v55  ;;  %vm407_vm5 = vcmp.gt.f32.partialorder %v3795_v61, 0.0 }
 0x124   :  { %v3330_v30 = vpop.eup %3329  ;;  %3341 = vpow2.f32 %v465_v49  ;;  %vm408_vm6 = vcmp.gt.f32.partialorder %v3805_v8, 0.0  ;;  %vm410_vm7 = vcmp.gt.f32.partialorder %v3799_v5, 0.0 }
 0x125   :  { %v3332_v34 = vpop.eup %3331  ;;  %3343 = vpow2.f32 %v461_v26  ;;  %v2819_v36 = vpop.f32.mrb[24].mxu0  ;;  %2853 = vmatprep.mubr.bf16.mxu0 %v569_v28  ;;  %v2463_v44 = vadd.f32 -1.0, %v3330_v30 }
 0x126   :  { %v3334_v59 = vpop.eup %3333  ;;  %v3817_v39 = vadd.f32 %v2819_v36, %v3698_v33  ;;  %v356_v35 = vpop.f32.mrb[25].mxu0  ;;  %v2461_v41 = vadd.f32 -1.0, %v3332_v34  ;;  %2854 = vmatmul.mubr.bf16.gmra.mrb[44].mxu0 %v570_v51 }
 0x127   :  { %v3336_v42 = vpop.eup %3335  ;;  %v3821_v46 = vadd.f32 %v3698_v33, %v356_v35  ;;  %v2820_v45 = vpop.f32.mrb[26].mxu0  ;;  %v2464_v56 = vadd.f32 -1.0, %v3334_v59  ;;  %v533_v62 = vsel %vm405_vm0, %v3764_v27, %v2463_v44  ;;  %v3259_v59 = vld [vmem:[%s4645_s1 + $0x44] ss:$16 sps:$4 sm:$0xff]  }
 0x128   :  { %v471_v48 = vmul.f32 1.442695, %v3817_v39  ;;  %v3825_v50 = vadd.f32 %v2820_v45, %v3698_v33  ;;  %v359_v37 = vpop.f32.mrb[27].mxu0  ;;  %v2462_v43 = vadd.f32 -1.0, %v3336_v42  ;;  %v531_v9 = vsel %vm403_vm1, %v3769_v52, %v2461_v41 }
 0x129   :  { %v467_v53 = vmul.f32 1.442695, %v3821_v46  ;;  %v3829_v54 = vadd.f32 %v3698_v33, %v359_v37  ;;  %v534_v0 = vsel %vm406_vm3, %v3774_v38, %v2464_v56  ;;  %vm413_vm8 = vcmp.gt.f32.partialorder %v3817_v39, 0.0 }
 0x12a   :  { %3345 = vpow2.f32 %v471_v48  ;;  %v473_v63 = vmul.f32 1.442695, %v3825_v50  ;;  %v532_v57 = vsel %vm404_vm2, %v3778_v40, %v2462_v43  ;;  %v572_v52 = vpack.c.bf16 %v534_v0, %v533_v62  ;;  %v3258_v40 = vld [vmem:[%s4645_s1 + $0x24] ss:$16 sps:$4 sm:$0xff]  }
 0x12b   :  { %3347 = vpow2.f32 %v467_v53  ;;  %v469_v60 = vmul.f32 1.442695, %v3829_v54  ;;  %v571_v3 = vpack.c.bf16 %v532_v57, %v531_v9  ;;  %vm414_vm9 = vcmp.gt.f32.partialorder %v3825_v50, 0.0 }
 0x12c   :  { %v3338_v29 = vpop.eup %3337  ;;  %3349 = vpow2.f32 %v473_v63  ;;  %vm411_vm10 = vcmp.gt.f32.partialorder %v3821_v46, 0.0  ;;  %vm412_vm11 = vcmp.gt.f32.partialorder %v3829_v54, 0.0 }
 0x12d   :  { %v3340_v1 = vpop.eup %3339  ;;  %3351 = vpow2.f32 %v469_v60  ;;  %v2823_v2 = vpop.f32.mrb[28].mxu0  ;;  %2857 = vmatprep.mubr.bf16.mxu1 %v571_v3  ;;  %v2467_v27 = vadd.f32 -1.0, %v3338_v29 }
 0x12e   :  { %v3342_v6 = vpop.eup %3341  ;;  %v2465_v7 = vadd.f32 -1.0, %v3340_v1  ;;  %v3846_v49 = vadd.f32 %v2823_v2, %v3698_v33  ;;  %v372_v55 = vpop.f32.mrb[29].mxu0  ;;  %2858 = vmatmul.mubr.bf16.vlgmr.msra.gmra.mrb[0].mxu1 %v572_v52 }
 0x12f   :  { %v3344_v10 = vpop.eup %3343  ;;  %v3850_v38 = vadd.f32 %v3698_v33, %v372_v55  ;;  %v2824_v26 = vpop.f32.mrb[30].mxu0  ;;  %v2468_v28 = vadd.f32 -1.0, %v3342_v6  ;;  %2874 = vmatpush3.bf16.msra.mxu1 %v3692_v32  ;;  %v537_v45 = vsel %vm409_vm4, %v3791_v58, %v2467_v27 }
 0x130   :  { %v2466_v30 = vadd.f32 -1.0, %v3344_v10  ;;  %v479_v47 = vmul.f32 1.442695, %v3846_v49  ;;  %v3855_v31 = vadd.f32 %v2824_v26, %v3698_v33  ;;  %v375_v34 = vpop.f32.mrb[31].mxu0  ;;  %2875 = vmatprep.subr.bf16.mxu1 %v3258_v40  ;;  %v535_v35 = vsel %vm407_vm5, %v3795_v61, %v2465_v7 }
 0x131   :  { %v475_v36 = vmul.f32 1.442695, %v3850_v38  ;;  %v3861_v51 = vadd.f32 %v3698_v33, %v375_v34  ;;  %v538_v56 = vsel %vm410_vm7, %v3799_v5, %v2468_v28  ;;  %v3261_v5 = vld [vmem:[%s4645_s1 + $0x84] ss:$16 sps:$4 sm:$0xff]   ;;  %vm417_vm12 = vcmp.gt.f32.partialorder %v3846_v49, 0.0 }
 0x132   :  { %3353 = vpow2.f32 %v479_v47  ;;  %v481_v32 = vmul.f32 1.442695, %v3855_v31  ;;  %v536_v41 = vsel %vm408_vm6, %v3805_v8, %v2466_v30  ;;  %v574_v61 = vpack.c.bf16 %v538_v56, %v537_v45  ;;  %v3260_v8 = vld [vmem:[%s4645_s1 + $0x64] ss:$16 sps:$4 sm:$0xff]  }
 0x133   :  { %3355 = vpow2.f32 %v475_v36  ;;  %v477_v42 = vmul.f32 1.442695, %v3861_v51  ;;  %v573_v44 = vpack.c.bf16 %v536_v41, %v535_v35  ;;  %2876 = vmatpush3.bf16.msra.mxu1 %v3258_v40  ;;  %v3262_v40 = vld [vmem:[%s4645_s1 + $0xa4] ss:$16 sps:$4 sm:$0xff]   ;;  %vm418_vm13 = vcmp.gt.f32.partialorder %v3855_v31, 0.0 }
 0x134   :  { %v3346_v33 = vpop.eup %3345  ;;  %3357 = vpow2.f32 %v481_v32  ;;  %2877 = vmatprep.subr.bf16.mxu1 %v3259_v59  ;;  %vm415_vm14 = vcmp.gt.f32.partialorder %v3850_v38, 0.0  ;;  %vm416_vm15 = vcmp.gt.f32.partialorder %v3861_v51, 0.0  ;;  %v3264_v47 = vld [vmem:[%s4645_s1 + $0xe4] ss:$16 sps:$4 sm:$0xff]  }
 0x135   :  { %v3348_v48 = vpop.eup %3347  ;;  %v2471_v37 = vadd.f32 -1.0, %v3346_v33  ;;  %3359 = vpow2.f32 %v477_v42  ;;  %2861 = vmatprep.mubr.bf16.mxu1 %v573_v44  ;;  %v3965_v42 = vld [vmem:[%s4649_s3] ss:$0 sm:$0xff] }
 0x136   :  { %v3350_v43 = vpop.eup %3349  ;;  %v2469_v53 = vadd.f32 -1.0, %v3348_v48  ;;  %2862 = vmatmul.mubr.bf16.gmra.mrb[4].mxu1 %v574_v61 }
 0x137   :  { %v3352_v63 = vpop.eup %3351  ;;  %v2472_v9 = vadd.f32 -1.0, %v3350_v43  ;;  %2878 = vmatpush3.bf16.msra.mxu1 %v3259_v59  ;;  %v541_v57 = vsel %vm413_vm8, %v3817_v39, %v2471_v37 }
 0x138   :  { %v2470_v58 = vadd.f32 -1.0, %v3352_v63  ;;  %2879 = vmatprep.subr.bf16.mxu1 %v3260_v8  ;;  %v539_v3 = vsel %vm411_vm10, %v3821_v46, %v2469_v53 }
 0x139   :  { %v542_v60 = vsel %vm414_vm9, %v3825_v50, %v2472_v9 }
 0x13a   :  { %v540_v29 = vsel %vm412_vm11, %v3829_v54, %v2470_v58  ;;  %v576_v62 = vpack.c.bf16 %v542_v60, %v541_v57  ;;  %v3263_v54 = vld [vmem:[%s4645_s1 + $0xc4] ss:$16 sps:$4 sm:$0xff]  }
 0x13b   :  { %v575_v0 = vpack.c.bf16 %v540_v29, %v539_v3  ;;  %2880 = vmatpush3.bf16.msra.mxu1 %v3260_v8 }
 0x13c   :  { %v3354_v1 = vpop.eup %3353  ;;  %2881 = vmatprep.subr.bf16.mxu1 %v3261_v5 }
 0x13d   :  { %v3356_v2 = vpop.eup %3355  ;;  %v2475_v52 = vadd.f32 -1.0, %v3354_v1  ;;  %2865 = vmatprep.mubr.bf16.mxu1 %v575_v0 }
 0x13e   :  { %v3358_v6 = vpop.eup %3357  ;;  %v2473_v39 = vadd.f32 -1.0, %v3356_v2  ;;  %2866 = vmatmul.mubr.bf16.gmra.mrb[8].mxu1 %v576_v62 }
 0x13f   :  { %v3360_v7 = vpop.eup %3359  ;;  %v2476_v50 = vadd.f32 -1.0, %v3358_v6  ;;  %2882 = vmatpush3.bf16.msra.mxu1 %v3261_v5  ;;  %v545_v55 = vsel %vm417_vm12, %v3846_v49, %v2475_v52 }
 0x140   :  { %v2474_v46 = vadd.f32 -1.0, %v3360_v7  ;;  %2883 = vmatprep.subr.bf16.mxu1 %v3262_v40  ;;  %v543_v27 = vsel %vm415_vm14, %v3850_v38, %v2473_v39 }
 0x141   :  { %v546_v10 = vsel %vm418_vm13, %v3855_v31, %v2476_v50 }
 0x142   :  { %v544_v26 = vsel %vm416_vm15, %v3861_v51, %v2474_v46  ;;  %v578_v28 = vpack.c.bf16 %v546_v10, %v545_v55 }
 0x143   :  { %v577_v30 = vpack.c.bf16 %v544_v26, %v543_v27  ;;  %2884 = vmatpush3.bf16.msra.mxu1 %v3262_v40 }
 0x144   :  { %2885 = vmatprep.subr.bf16.mxu1 %v3263_v54 }
 0x145   :  { %2869 = vmatprep.mubr.bf16.mxu1 %v577_v30 }
 0x146   :  { %2870 = vmatmul.mubr.bf16.gmra.mrb[12].mxu1 %v578_v28 }
 0x147   :  { %2886 = vmatpush3.bf16.msra.mxu1 %v3263_v54  ;;  %2889 = vmatprep.mubr.bf16.mxu1 %v3560_v4  ;;  %v3265_v4 = vld [vmem:[%s4647_s2 + $0x40] sm:$0xff]  }
 0x148   :  { %2887 = vmatprep.subr.bf16.mxu1 %v3264_v47  ;;  %2921 = vmatprep.subr.bf16.mxu0 %v3265_v4 }
 0x149   :  { %2922 = vmatpush3.bf16.msra.mxu0 %v3265_v4 }
 0x14b   :  { %2888 = vmatpush3.bf16.msra.mxu1 %v3264_v47 }
 0x14e   :  { %2890 = vmatmul.mubr.bf16.vlgmr.msra.gmra.mrb[16].mxu1 %v3584_v11  ;;  %v3266_v11 = vld [vmem:[%s4647_s2 + $0x48] sm:$0xff]  }
 0x14f   :  { %2893 = vmatprep.mubr.bf16.mxu1 %v3589_v12  ;;  %2923 = vmatprep.subr.bf16.mxu0 %v3266_v11  ;;  %v3267_v12 = vld [vmem:[%s4647_s2 + $0x50] sm:$0xff]  }
 0x150   :  { %2924 = vmatpush3.bf16.msra.mxu0 %v3266_v11 }
 0x151   :  { %2925 = vmatprep.subr.bf16.mxu0 %v3267_v12 }
 0x154   :  { %2926 = vmatpush3.bf16.msra.mxu0 %v3267_v12 }
 0x156   :  { %2894 = vmatmul.mubr.bf16.gmra.mrb[20].mxu1 %v3596_v13  ;;  %v3268_v13 = vld [vmem:[%s4647_s2 + $0x58] sm:$0xff]  }
 0x157   :  { %2897 = vmatprep.mubr.bf16.mxu1 %v3601_v14  ;;  %2927 = vmatprep.subr.bf16.mxu0 %v3268_v13  ;;  %v3269_v14 = vld [vmem:[%s4647_s2 + $0x60] sm:$0xff]  }
 0x158   :  { %2928 = vmatpush3.bf16.msra.mxu0 %v3268_v13 }
 0x159   :  { %2929 = vmatprep.subr.bf16.mxu0 %v3269_v14 }
 0x15c   :  { %2930 = vmatpush3.bf16.msra.mxu0 %v3269_v14 }
 0x15e   :  { %2898 = vmatmul.mubr.bf16.gmra.mrb[24].mxu1 %v3608_v15  ;;  %v3270_v15 = vld [vmem:[%s4647_s2 + $0x68] sm:$0xff]  }
 0x15f   :  { %2901 = vmatprep.mubr.bf16.mxu1 %v3613_v16  ;;  %2931 = vmatprep.subr.bf16.mxu0 %v3270_v15  ;;  %v3271_v16 = vld [vmem:[%s4647_s2 + $0x70] sm:$0xff]  }
 0x160   :  { %2932 = vmatpush3.bf16.msra.mxu0 %v3270_v15 }
 0x161   :  { %2933 = vmatprep.subr.bf16.mxu0 %v3271_v16 }
 0x164   :  { %2934 = vmatpush3.bf16.msra.mxu0 %v3271_v16 }
 0x166   :  { %2902 = vmatmul.mubr.bf16.gmra.mrb[28].mxu1 %v3620_v17  ;;  %v3272_v17 = vld [vmem:[%s4647_s2 + $0x78] sm:$0xff]  }
 0x167   :  { %2905 = vmatprep.mubr.bf16.mxu1 %v3625_v18  ;;  %2935 = vmatprep.subr.bf16.mxu0 %v3272_v17  ;;  %v3949_v18 = vld [vmem:[%s4645_s1 + $0x8] ss:$16 sps:$4 sm:$0xff]  }
 0x168   :  { %2936 = vmatpush3.bf16.msra.mxu0 %v3272_v17 }
 0x169   :  { %2969 = vmatprep.subr.bf16.mxu0 %v3949_v18 }
 0x16e   :  { %2906 = vmatmul.mubr.bf16.gmra.mrb[0].mxu1 %v3632_v19 }
 0x16f   :  { %2909 = vmatprep.mubr.bf16.mxu1 %v3637_v20 }
 0x176   :  { %2910 = vmatmul.mubr.bf16.gmra.mrb[4].mxu1 %v3644_v21 }
 0x177   :  { %2913 = vmatprep.mubr.bf16.mxu1 %v3649_v22 }
 0x17e   :  { %2914 = vmatmul.mubr.bf16.gmra.mrb[8].mxu1 %v3656_v23 }
 0x17f   :  { %2917 = vmatprep.mubr.bf16.mxu1 %v3661_v24 }
 0x186   :  { %2918 = vmatmul.mubr.bf16.gmra.mrb[12].mxu1 %v3668_v25 }
 0x1e1   :  { %v2843_v19 = vpop.f32.mrb[32].mxu0 }
 0x1e2   :  { %v677_v20 = vpop.f32.mrb[33].mxu0 }
 0x1e3   :  { %v2844_v21 = vpop.f32.mrb[34].mxu0 }
 0x1e4   :  { %v680_v22 = vpop.f32.mrb[35].mxu0 }
 0x1e9   :  { %v2847_v23 = vpop.f32.mrb[36].mxu0 }
 0x1ea   :  { %v693_v24 = vpop.f32.mrb[37].mxu0 }
 0x1eb   :  { %v2848_v25 = vpop.f32.mrb[38].mxu0 }
 0x1ec   :  { %v696_v49 = vpop.f32.mrb[39].mxu0 }
 0x1f1   :  { %v2851_v38 = vpop.f32.mrb[40].mxu0 }
 0x1f2   :  { %v709_v31 = vpop.f32.mrb[41].mxu0 }
 0x1f3   :  { %v2852_v34 = vpop.f32.mrb[42].mxu0 }
 0x1f4   :  { %v3952_v36 = vpop.f32.mrb[43].mxu0 }
 0x1f9   :  { %v3954_v51 = vpop.f32.mrb[44].mxu0 }
 0x1fa   :  { %v3956_v59 = vpop.f32.mrb[45].mxu0 }
 0x1fb   :  { %v3958_v32 = vpop.f32.mrb[46].mxu0 }
 0x1fc   :  { %v3960_v35 = vpop.f32.mrb[47].mxu0 }
 0x221   :  { %v2891_v41 = vpop.f32.mrb[16].mxu1 }
 0x222   :  { %v895_v44 = vadd.f32 %v2891_v41, %v2843_v19  ;;  %v886_v33 = vpop.f32.mrb[17].mxu1 }
 0x223   :  { %v887_v45 = vadd.f32 %v886_v33, %v677_v20  ;;  %v2892_v56 = vpop.f32.mrb[18].mxu1 }
 0x224   :  { %v1022_v48 = vadd.f32 %v3965_v42, %v895_v44  ;;  %v898_v37 = vadd.f32 %v2892_v56, %v2844_v21  ;;  %v889_v61 = vpop.f32.mrb[19].mxu1  ;;  %v3282_v44 = vld [vmem:[%s4650_s4 + $0x8] sm:$0xff]  }
 0x225   :  { %v3969_v8 = vadd.f32 %v3965_v42, %v887_v45  ;;  %v890_v43 = vadd.f32 %v889_v61, %v680_v22 }
 0x226   :  { %v1088_v53 = vmul.f32 1.442695, %v1022_v48  ;;  %v1023_v63 = vadd.f32 %v3965_v42, %v898_v37  ;;  %vm1054_vm0 = vcmp.gt.f32.partialorder %v1022_v48, 0.0 }
 0x227   :  { %v1084_v9 = vmul.f32 1.442695, %v3969_v8  ;;  %v3974_v58 = vadd.f32 %v3965_v42, %v890_v43  ;;  %vm1052_vm2 = vcmp.gt.f32.partialorder %v3969_v8, 0.0 }
 0x228   :  { %3361 = vpow2.f32 %v1088_v53  ;;  %v1090_v5 = vmul.f32 1.442695, %v1023_v63  ;;  %vm1055_vm1 = vcmp.gt.f32.partialorder %v1023_v63, 0.0 }
 0x229   :  { %3363 = vpow2.f32 %v1084_v9  ;;  %v1086_v57 = vmul.f32 1.442695, %v3974_v58  ;;  %v2895_v60 = vpop.f32.mrb[20].mxu1  ;;  %vm1053_vm3 = vcmp.gt.f32.partialorder %v3974_v58, 0.0 }
 0x22a   :  { %3365 = vpow2.f32 %v1090_v5  ;;  %v911_v3 = vadd.f32 %v2895_v60, %v2847_v23  ;;  %v902_v29 = vpop.f32.mrb[21].mxu1 }
 0x22b   :  { %3367 = vpow2.f32 %v1086_v57  ;;  %v903_v62 = vadd.f32 %v902_v29, %v693_v24  ;;  %v2896_v0 = vpop.f32.mrb[22].mxu1  ;;  %v3283_v57 = vld [vmem:[%s4650_s4 + $0x10] sm:$0xff]   ;;  %v3274_v29 = vld [vmem:[%s4645_s1 + $0x28] ss:$16 sps:$4 sm:$0xff]  }
 0x22c   :  { %v3978_v1 = vadd.f32 %v3965_v42, %v911_v3  ;;  %v914_v2 = vadd.f32 %v2896_v0, %v2848_v25  ;;  %v905_v52 = vpop.f32.mrb[23].mxu1 }
 0x22d   :  { %v3981_v40 = vadd.f32 %v3965_v42, %v903_v62  ;;  %v906_v6 = vadd.f32 %v905_v52, %v696_v49 }
 0x22e   :  { %v1096_v39 = vmul.f32 1.442695, %v3978_v1  ;;  %v3985_v7 = vadd.f32 %v3965_v42, %v914_v2  ;;  %vm1058_vm4 = vcmp.gt.f32.partialorder %v3978_v1, 0.0 }
 0x22f   :  { %v1092_v50 = vmul.f32 1.442695, %v3981_v40  ;;  %v3989_v46 = vadd.f32 %v3965_v42, %v906_v6  ;;  %vm1056_vm5 = vcmp.gt.f32.partialorder %v3981_v40, 0.0 }
 0x230   :  { %3369 = vpow2.f32 %v1096_v39  ;;  %v1098_v54 = vmul.f32 1.442695, %v3985_v7  ;;  %vm1059_vm7 = vcmp.gt.f32.partialorder %v3985_v7, 0.0 }
 0x231   :  { %3371 = vpow2.f32 %v1092_v50  ;;  %v1094_v55 = vmul.f32 1.442695, %v3989_v46  ;;  %v2899_v10 = vpop.f32.mrb[24].mxu1  ;;  %v3275_v50 = vld [vmem:[%s4645_s1 + $0x48] ss:$16 sps:$4 sm:$0xff]   ;;  %vm1057_vm6 = vcmp.gt.f32.partialorder %v3989_v46, 0.0 }
 0x232   :  { %v3362_v27 = vpop.eup %3361  ;;  %3373 = vpow2.f32 %v1098_v54  ;;  %v927_v26 = vadd.f32 %v2899_v10, %v2851_v38  ;;  %v918_v28 = vpop.f32.mrb[25].mxu1 }
 0x233   :  { %v3364_v30 = vpop.eup %3363  ;;  %v2496_v47 = vadd.f32 -1.0, %v3362_v27  ;;  %3375 = vpow2.f32 %v1094_v55  ;;  %v919_v4 = vadd.f32 %v918_v28, %v709_v31  ;;  %v2900_v11 = vpop.f32.mrb[26].mxu1 }
 0x234   :  { %v3366_v12 = vpop.eup %3365  ;;  %v3994_v13 = vadd.f32 %v3965_v42, %v927_v26  ;;  %v930_v14 = vadd.f32 %v2900_v11, %v2852_v34  ;;  %v921_v15 = vpop.f32.mrb[27].mxu1  ;;  %v2494_v23 = vadd.f32 -1.0, %v3364_v30  ;;  %v3281_v34 = vld [vmem:[%s4650_s4] sm:$0xff]   ;;  %v3284_v26 = vld [vmem:[%s4650_s4 + $0x18] sm:$0xff]  }
 0x235   :  { %v3368_v16 = vpop.eup %3367  ;;  %v2497_v17 = vadd.f32 -1.0, %v3366_v12  ;;  %v3997_v19 = vadd.f32 %v3965_v42, %v919_v4  ;;  %v922_v20 = vadd.f32 %v921_v15, %v3952_v36  ;;  %v1182_v25 = vsel %vm1054_vm0, %v1022_v48, %v2496_v47  ;;  %3017 = vmatprep.subr.bf16.mxu1 %v3281_v34 }
 0x236   :  { %v1104_v21 = vmul.f32 1.442695, %v3994_v13  ;;  %v4002_v22 = vadd.f32 %v3965_v42, %v930_v14  ;;  %v2495_v24 = vadd.f32 -1.0, %v3368_v16  ;;  %v1180_v61 = vsel %vm1052_vm2, %v3969_v8, %v2494_v23  ;;  %3018 = vmatpush3.bf16.msra.mxu1 %v3281_v34 }
 0x237   :  { %v1183_v49 = vsel %vm1055_vm1, %v1023_v63, %v2497_v17  ;;  %v1100_v38 = vmul.f32 1.442695, %v3997_v19  ;;  %v4006_v31 = vadd.f32 %v3965_v42, %v922_v20  ;;  %3019 = vmatprep.subr.bf16.mxu1 %v3282_v44  ;;  %vm1062_vm8 = vcmp.gt.f32.partialorder %v3994_v13, 0.0  ;;  %v3276_v17 = vld [vmem:[%s4645_s1 + $0x68] ss:$16 sps:$4 sm:$0xff]  }
 0x238   :  { %v1229_v36 = vpack.c.bf16 %v1183_v49, %v1182_v25  ;;  %3377 = vpow2.f32 %v1104_v21  ;;  %v1106_v41 = vmul.f32 1.442695, %v4002_v22  ;;  %v1181_v43 = vsel %vm1053_vm3, %v3974_v58, %v2495_v24 }
 0x239   :  { %3379 = vpow2.f32 %v1100_v38  ;;  %v1102_v33 = vmul.f32 1.442695, %v4006_v31  ;;  %v2903_v45 = vpop.f32.mrb[28].mxu1  ;;  %v1228_v5 = vpack.c.bf16 %v1181_v43, %v1180_v61  ;;  %vm1060_vm9 = vcmp.gt.f32.partialorder %v3997_v19, 0.0  ;;  %v3277_v61 = vld [vmem:[%s4645_s1 + $0x88] ss:$16 sps:$4 sm:$0xff]  }
 0x23a   :  { %v3370_v56 = vpop.eup %3369  ;;  %3381 = vpow2.f32 %v1106_v41  ;;  %v943_v48 = vadd.f32 %v2903_v45, %v3954_v51  ;;  %v934_v37 = vpop.f32.mrb[29].mxu1  ;;  %3020 = vmatpush3.bf16.msra.mxu1 %v3282_v44  ;;  %vm1063_vm10 = vcmp.gt.f32.partialorder %v4002_v22, 0.0  ;;  %vm1061_vm11 = vcmp.gt.f32.partialorder %v4006_v31, 0.0 }
 0x23b   :  { %v3372_v53 = vpop.eup %3371  ;;  %3383 = vpow2.f32 %v1102_v33  ;;  %v935_v63 = vadd.f32 %v934_v37, %v3956_v59  ;;  %v2904_v9 = vpop.f32.mrb[30].mxu1  ;;  %2937 = vmatprep.mubr.bf16.mxu0 %v1228_v5  ;;  %v2500_v2 = vadd.f32 -1.0, %v3370_v56  ;;  %3021 = vmatprep.subr.bf16.mxu1 %v3283_v57 }
 0x23c   :  { %v3374_v60 = vpop.eup %3373  ;;  %v4026_v51 = vadd.f32 %v3965_v42, %v943_v48  ;;  %v946_v8 = vadd.f32 %v2904_v9, %v3958_v32  ;;  %v937_v3 = vpop.f32.mrb[31].mxu1  ;;  %v2498_v58 = vadd.f32 -1.0, %v3372_v53  ;;  %2938 = vmatmul.mubr.bf16.vlgmr.msra.gmra.mrb[48].mxu0 %v1229_v36 }
 0x23d   :  { %v3376_v59 = vpop.eup %3375  ;;  %v4034_v62 = vadd.f32 %v3965_v42, %v935_v63  ;;  %v938_v0 = vadd.f32 %v937_v3, %v3960_v35  ;;  %v2501_v39 = vadd.f32 -1.0, %v3374_v60  ;;  %2970 = vmatpush3.bf16.msra.mxu0 %v3949_v18 }
 0x23e   :  { %v1112_v52 = vmul.f32 1.442695, %v4026_v51  ;;  %v4039_v32 = vadd.f32 %v3965_v42, %v946_v8  ;;  %v2499_v6 = vadd.f32 -1.0, %v3376_v59  ;;  %v1184_v10 = vsel %vm1056_vm5, %v3981_v40, %v2498_v58  ;;  %2971 = vmatprep.subr.bf16.mxu0 %v3274_v29  ;;  %3022 = vmatpush3.bf16.msra.mxu1 %v3283_v57  ;;  %v3278_v57 = vld [vmem:[%s4645_s1 + $0xa8] ss:$16 sps:$4 sm:$0xff]  }
 0x23f   :  { %v1108_v35 = vmul.f32 1.442695, %v4034_v62  ;;  %v4048_v54 = vadd.f32 %v3965_v42, %v938_v0  ;;  %v1187_v11 = vsel %vm1059_vm7, %v3985_v7, %v2501_v39  ;;  %3023 = vmatprep.subr.bf16.mxu1 %v3284_v26  ;;  %vm1066_vm12 = vcmp.gt.f32.partialorder %v4026_v51, 0.0 }
 0x240   :  { %3385 = vpow2.f32 %v1112_v52  ;;  %v1114_v55 = vmul.f32 1.442695, %v4039_v32  ;;  %v1185_v27 = vsel %vm1057_vm6, %v3989_v46, %v2499_v6  ;;  %v1186_v46 = vsel %vm1058_vm4, %v3978_v1, %v2500_v2  ;;  %v3285_v1 = vld [vmem:[%s4650_s4 + $0x20] sm:$0xff]  }
 0x241   :  { %3387 = vpow2.f32 %v1108_v35  ;;  %v1110_v28 = vmul.f32 1.442695, %v4048_v54  ;;  %v2907_v30 = vpop.f32.mrb[0].mxu1  ;;  %v1230_v18 = vpack.c.bf16 %v1185_v27, %v1184_v10  ;;  %v1231_v16 = vpack.c.bf16 %v1187_v11, %v1186_v46  ;;  %2972 = vmatpush3.bf16.msra.mxu0 %v3274_v29 }
 0x242   :  { %v3378_v47 = vpop.eup %3377  ;;  %3389 = vpow2.f32 %v1114_v55  ;;  %v4060_v4 = vadd.f32 %v2907_v30, %v3965_v42  ;;  %v950_v40 = vpop.f32.mrb[1].mxu1  ;;  %2973 = vmatprep.subr.bf16.mxu0 %v3275_v50  ;;  %3024 = vmatpush3.bf16.msra.mxu1 %v3284_v26  ;;  %vm1064_vm13 = vcmp.gt.f32.partialorder %v4034_v62, 0.0  ;;  %vm1067_vm14 = vcmp.gt.f32.partialorder %v4039_v32, 0.0  ;;  %v3279_v30 = vld [vmem:[%s4645_s1 + $0xc8] ss:$16 sps:$4 sm:$0xff]  }
 0x243   :  { %v3380_v12 = vpop.eup %3379  ;;  %3391 = vpow2.f32 %v1110_v28  ;;  %v4068_v14 = vadd.f32 %v3965_v42, %v950_v40  ;;  %v2908_v15 = vpop.f32.mrb[2].mxu1  ;;  %2941 = vmatprep.mubr.bf16.mxu0 %v1230_v18  ;;  %v2504_v25 = vadd.f32 -1.0, %v3378_v47  ;;  %3025 = vmatprep.subr.bf16.mxu1 %v3285_v1  ;;  %vm1065_vm15 = vcmp.gt.f32.partialorder %v4048_v54, 0.0 }
 0x244   :  { %v3382_v7 = vpop.eup %3381  ;;  %v1120_v20 = vmul.f32 1.442695, %v4060_v4  ;;  %v4078_v21 = vadd.f32 %v2908_v15, %v3965_v42  ;;  %v953_v23 = vpop.f32.mrb[3].mxu1  ;;  %v2502_v24 = vadd.f32 -1.0, %v3380_v12  ;;  %2942 = vmatmul.mubr.bf16.gmra.mrb[52].mxu0 %v1231_v16  ;;  %vm1070_vm0 = vcmp.gt.f32.partialorder %v4060_v4, 0.0 }
 0x245   :  { %v3384_v49 = vpop.eup %3383  ;;  %v1116_v38 = vmul.f32 1.442695, %v4068_v14  ;;  %v4083_v34 = vadd.f32 %v3965_v42, %v953_v23  ;;  %v2505_v36 = vadd.f32 -1.0, %v3382_v7  ;;  %2974 = vmatpush3.bf16.msra.mxu0 %v3275_v50  ;;  %v1190_v48 = vsel %vm1062_vm8, %v3994_v13, %v2504_v25 }
 0x246   :  { %3393 = vpow2.f32 %v1120_v20  ;;  %v1122_v41 = vmul.f32 1.442695, %v4078_v21  ;;  %v2503_v44 = vadd.f32 -1.0, %v3384_v49  ;;  %v1188_v45 = vsel %vm1060_vm9, %v3997_v19, %v2502_v24  ;;  %2975 = vmatprep.subr.bf16.mxu0 %v3276_v17  ;;  %3026 = vmatpush3.bf16.msra.mxu1 %v3285_v1 }
 0x247   :  { %3395 = vpow2.f32 %v1116_v38  ;;  %v1118_v33 = vmul.f32 1.442695, %v4083_v34  ;;  %v1191_v37 = vsel %vm1063_vm10, %v4002_v22, %v2505_v36  ;;  %vm1068_vm1 = vcmp.gt.f32.partialorder %v4068_v14, 0.0 }
 0x248   :  { %3397 = vpow2.f32 %v1122_v41  ;;  %v1189_v56 = vsel %vm1061_vm11, %v4006_v31, %v2503_v44  ;;  %v1233_v19 = vpack.c.bf16 %v1191_v37, %v1190_v48  ;;  %vm1069_vm2 = vcmp.gt.f32.partialorder %v4083_v34, 0.0 }
 0x249   :  { %3399 = vpow2.f32 %v1118_v33  ;;  %v2911_v43 = vpop.f32.mrb[4].mxu1  ;;  %v1232_v53 = vpack.c.bf16 %v1189_v56, %v1188_v45  ;;  %2976 = vmatpush3.bf16.msra.mxu0 %v3276_v17  ;;  %v3280_v17 = vld [vmem:[%s4645_s1 + $0xe8] ss:$16 sps:$4 sm:$0xff]   ;;  %vm1071_vm3 = vcmp.gt.f32.partialorder %v4078_v21, 0.0 }
 0x24a   :  { %v3386_v63 = vpop.eup %3385  ;;  %v4099_v9 = vadd.f32 %v2911_v43, %v3965_v42  ;;  %v966_v31 = vpop.f32.mrb[5].mxu1  ;;  %2977 = vmatprep.subr.bf16.mxu0 %v3277_v61 }
 0x24b   :  { %v3388_v5 = vpop.eup %3387  ;;  %v4103_v13 = vadd.f32 %v3965_v42, %v966_v31  ;;  %v2912_v22 = vpop.f32.mrb[6].mxu1  ;;  %2945 = vmatprep.mubr.bf16.mxu0 %v1232_v53  ;;  %v2508_v59 = vadd.f32 -1.0, %v3386_v63 }
 0x24c   :  { %v3390_v60 = vpop.eup %3389  ;;  %v1128_v8 = vmul.f32 1.442695, %v4099_v9  ;;  %v4110_v3 = vadd.f32 %v2912_v22, %v3965_v42  ;;  %v969_v58 = vpop.f32.mrb[7].mxu1  ;;  %v2506_v29 = vadd.f32 -1.0, %v3388_v5  ;;  %2946 = vmatmul.mubr.bf16.gmra.mrb[56].mxu0 %v1233_v19  ;;  %vm1074_vm4 = vcmp.gt.f32.partialorder %v4099_v9, 0.0 }
 0x24d   :  { %v3392_v0 = vpop.eup %3391  ;;  %v1124_v2 = vmul.f32 1.442695, %v4103_v13  ;;  %v4115_v52 = vadd.f32 %v3965_v42, %v969_v58  ;;  %v2509_v6 = vadd.f32 -1.0, %v3390_v60  ;;  %2978 = vmatpush3.bf16.msra.mxu0 %v3277_v61  ;;  %v1194_v26 = vsel %vm1066_vm12, %v4026_v51, %v2508_v59 }
 0x24e   :  { %3401 = vpow2.f32 %v1128_v8  ;;  %v1130_v39 = vmul.f32 1.442695, %v4110_v3  ;;  %v2507_v50 = vadd.f32 -1.0, %v3392_v0  ;;  %v1192_v55 = vsel %vm1064_vm13, %v4034_v62, %v2506_v29  ;;  %2979 = vmatprep.subr.bf16.mxu0 %v3278_v57 }
 0x24f   :  { %3403 = vpow2.f32 %v1124_v2  ;;  %v1126_v35 = vmul.f32 1.442695, %v4115_v52  ;;  %v1195_v28 = vsel %vm1067_vm14, %v4039_v32, %v2509_v6  ;;  %vm1072_vm5 = vcmp.gt.f32.partialorder %v4103_v13, 0.0 }
 0x250   :  { %v3394_v10 = vpop.eup %3393  ;;  %3405 = vpow2.f32 %v1130_v39  ;;  %v1193_v27 = vsel %vm1065_vm15, %v4048_v54, %v2507_v50  ;;  %v1235_v40 = vpack.c.bf16 %v1195_v28, %v1194_v26  ;;  %vm1073_vm6 = vcmp.gt.f32.partialorder %v4115_v52, 0.0 }
 0x251   :  { %v3396_v18 = vpop.eup %3395  ;;  %3407 = vpow2.f32 %v1126_v35  ;;  %v2915_v47 = vpop.f32.mrb[8].mxu1  ;;  %v1234_v62 = vpack.c.bf16 %v1193_v27, %v1192_v55  ;;  %v2512_v51 = vadd.f32 -1.0, %v3394_v10  ;;  %2980 = vmatpush3.bf16.msra.mxu0 %v3278_v57  ;;  %vm1075_vm7 = vcmp.gt.f32.partialorder %v4110_v3, 0.0 }
 0x252   :  { %v3398_v46 = vpop.eup %3397  ;;  %v2510_v11 = vadd.f32 -1.0, %v3396_v18  ;;  %v4131_v54 = vadd.f32 %v2915_v47, %v3965_v42  ;;  %v982_v12 = vpop.f32.mrb[9].mxu1  ;;  %2981 = vmatprep.subr.bf16.mxu0 %v3279_v30 }
 0x253   :  { %v3400_v15 = vpop.eup %3399  ;;  %v4135_v32 = vadd.f32 %v3965_v42, %v982_v12  ;;  %v2916_v16 = vpop.f32.mrb[10].mxu1  ;;  %2949 = vmatprep.mubr.bf16.mxu0 %v1234_v62  ;;  %v2513_v1 = vadd.f32 -1.0, %v3398_v46  ;;  %v1198_v56 = vsel %vm1070_vm0, %v4060_v4, %v2512_v51 }
 0x254   :  { %v2511_v7 = vadd.f32 -1.0, %v3400_v15  ;;  %v1136_v20 = vmul.f32 1.442695, %v4131_v54  ;;  %v4142_v23 = vadd.f32 %v2916_v16, %v3965_v42  ;;  %v985_v24 = vpop.f32.mrb[11].mxu1  ;;  %2950 = vmatmul.mubr.bf16.gmra.mrb[60].mxu0 %v1235_v40  ;;  %v1196_v36 = vsel %vm1068_vm1, %v4068_v14, %v2510_v11 }
 0x255   :  { %v1132_v25 = vmul.f32 1.442695, %v4135_v32  ;;  %v4148_v49 = vadd.f32 %v3965_v42, %v985_v24  ;;  %2982 = vmatpush3.bf16.msra.mxu0 %v3279_v30  ;;  %v1199_v48 = vsel %vm1071_vm3, %v4078_v21, %v2513_v1  ;;  %vm1078_vm8 = vcmp.gt.f32.partialorder %v4131_v54, 0.0 }
 0x256   :  { %3409 = vpow2.f32 %v1136_v20  ;;  %v1138_v38 = vmul.f32 1.442695, %v4142_v23  ;;  %v1197_v41 = vsel %vm1069_vm2, %v4083_v34, %v2511_v7  ;;  %2983 = vmatprep.subr.bf16.mxu0 %v3280_v17  ;;  %v1237_v34 = vpack.c.bf16 %v1199_v48, %v1198_v56  ;;  %v4242_v56 = vld [vmem:[%s4646_s0 + $0x40] sm:$0xff]   ;;  %v4248_v48 = vld [vmem:[%s4646_s0 + $0x48] sm:$0xff]  }
 0x257   :  { %3411 = vpow2.f32 %v1132_v25  ;;  %v1134_v44 = vmul.f32 1.442695, %v4148_v49  ;;  %v1236_v33 = vpack.c.bf16 %v1197_v41, %v1196_v36  ;;  %vm1079_vm9 = vcmp.gt.f32.partialorder %v4142_v23, 0.0  ;;  %v4194_v25 = vld [vmem:[%s4646_s0] sm:$0xff]   ;;  %v4212_v36 = vld [vmem:[%s4646_s0 + $0x18] sm:$0xff]  }
 0x258   :  { %v3402_v45 = vpop.eup %3401  ;;  %3413 = vpow2.f32 %v1138_v38  ;;  %vm1076_vm10 = vcmp.gt.f32.partialorder %v4135_v32, 0.0  ;;  %vm1077_vm11 = vcmp.gt.f32.partialorder %v4148_v49, 0.0  ;;  %v4206_v38 = vld [vmem:[%s4646_s0 + $0x10] sm:$0xff]   ;;  %v4218_v41 = vld [vmem:[%s4646_s0 + $0x20] sm:$0xff]  }
 0x259   :  { %v3404_v37 = vpop.eup %3403  ;;  %3415 = vpow2.f32 %v1134_v44  ;;  %v2919_v14 = vpop.f32.mrb[12].mxu1  ;;  %2953 = vmatprep.mubr.bf16.mxu0 %v1236_v33  ;;  %v2516_v31 = vadd.f32 -1.0, %v3402_v45  ;;  %2984 = vmatpush3.bf16.msra.mxu0 %v3280_v17  ;;  %v4224_v44 = vld [vmem:[%s4646_s0 + $0x28] sm:$0xff]   ;;  %v4230_v33 = vld [vmem:[%s4646_s0 + $0x30] sm:$0xff]   ;;  %v4236_v45 = vld [vmem:[%s4646_s0 + $0x38] sm:$0xff]  }
 0x25a   :  { %v3406_v61 = vpop.eup %3405  ;;  %v2514_v43 = vadd.f32 -1.0, %v3404_v37  ;;  %v4160_v53 = vadd.f32 %v2919_v14, %v3965_v42  ;;  %v998_v19 = vpop.f32.mrb[13].mxu1  ;;  %v4254_v37 = vld [vmem:[%s4646_s0 + $0x50] sm:$0xff]   ;;  %v4260_v14 = vld [vmem:[%s4646_s0 + $0x58] sm:$0xff]  }
 0x25b   :  { %v3408_v63 = vpop.eup %3407  ;;  %v4164_v4 = vadd.f32 %v3965_v42, %v998_v19  ;;  %v2920_v21 = vpop.f32.mrb[14].mxu1  ;;  %v2517_v5 = vadd.f32 -1.0, %v3406_v61  ;;  %v1202_v35 = vsel %vm1074_vm4, %v4099_v9, %v2516_v31  ;;  %v4272_v61 = vld [vmem:[%s4646_s0 + $0x68] sm:$0xff]   ;;  %v3288_v31 = vld [vmem:[%s4650_s4 + $0x38] sm:$0xff]  }
 0x25c   :  { %v2515_v22 = vadd.f32 -1.0, %v3408_v63  ;;  %v1144_v57 = vmul.f32 1.442695, %v4160_v53  ;;  %v1051_v60 = vadd.f32 %v2920_v21, %v3965_v42  ;;  %v1001_v8 = vpop.f32.mrb[15].mxu1  ;;  %2954 = vmatmul.mubr.bf16.gmra.mrb[64].mxu0 %v1237_v34  ;;  %v1200_v0 = vsel %vm1072_vm5, %v4103_v13, %v2514_v43  ;;  %v4266_v34 = vld [vmem:[%s4646_s0 + $0x60] sm:$0xff]   ;;  %v4278_v43 = vld [vmem:[%s4646_s0 + $0x70] sm:$0xff]  }
 0x25d   :  { %v1140_v58 = vmul.f32 1.442695, %v4164_v4  ;;  %v1049_v29 = vadd.f32 %v3965_v42, %v1001_v8  ;;  %v1203_v42 = vsel %vm1075_vm7, %v4110_v3, %v2517_v5  ;;  %vm1082_vm12 = vcmp.gt.f32.partialorder %v4160_v53, 0.0  ;;  %v3286_v19 = vld [vmem:[%s4650_s4 + $0x28] sm:$0xff]   ;;  %v3287_v63 = vld [vmem:[%s4650_s4 + $0x30] sm:$0xff]  }
 0x25e   :  { %3417 = vpow2.f32 %v1144_v57  ;;  %v1146_v59 = vmul.f32 1.442695, %v1051_v60  ;;  %v1201_v2 = vsel %vm1073_vm6, %v4115_v52, %v2515_v22  ;;  %v1239_v13 = vpack.c.bf16 %v1203_v42, %v1202_v35  ;;  %3027 = vmatprep.subr.bf16.mxu1 %v3286_v19  ;;  %v4305_v21 = vld [vmem:[%s4649_s3 + $0x1] ss:$0 sm:$0xff] }
 0x25f   :  { %3419 = vpow2.f32 %v1140_v58  ;;  %v1142_v6 = vmul.f32 1.442695, %v1049_v29  ;;  %v1238_v39 = vpack.c.bf16 %v1201_v2, %v1200_v0  ;;  %vm1083_vm13 = vcmp.gt.f32.partialorder %v1051_v60, 0.0  ;;  %3028 = vmatpush3.bf16.msra.mxu1 %v3286_v19 }
 0x260   :  { %v3410_v50 = vpop.eup %3409  ;;  %3421 = vpow2.f32 %v1146_v59  ;;  %vm1080_vm14 = vcmp.gt.f32.partialorder %v4164_v4, 0.0  ;;  %vm1081_vm15 = vcmp.gt.f32.partialorder %v1049_v29, 0.0  ;;  %3029 = vmatprep.subr.bf16.mxu1 %v3287_v63 }
 0x261   :  { %v3412_v55 = vpop.eup %3411  ;;  %v2520_v10 = vadd.f32 -1.0, %v3410_v50  ;;  %3423 = vpow2.f32 %v1142_v6  ;;  %2957 = vmatprep.mubr.bf16.mxu0 %v1238_v39 }
 0x262   :  { %v3414_v27 = vpop.eup %3413  ;;  %v2518_v52 = vadd.f32 -1.0, %v3412_v55 }
 0x263   :  { %v3416_v26 = vpop.eup %3415  ;;  %v2521_v28 = vadd.f32 -1.0, %v3414_v27  ;;  %v1206_v9 = vsel %vm1078_vm8, %v4131_v54, %v2520_v10  ;;  %3030 = vmatpush3.bf16.msra.mxu1 %v3287_v63 }
 0x264   :  { %v2519_v30 = vadd.f32 -1.0, %v3416_v26  ;;  %2958 = vmatmul.mubr.bf16.gmra.mrb[68].mxu0 %v1239_v13  ;;  %v1204_v18 = vsel %vm1076_vm10, %v4135_v32, %v2518_v52  ;;  %3031 = vmatprep.subr.bf16.mxu1 %v3288_v31 }
 0x265   :  { %v1207_v3 = vsel %vm1079_vm9, %v4142_v23, %v2521_v28 }
 0x266   :  { %v1205_v47 = vsel %vm1077_vm11, %v4148_v49, %v2519_v30  ;;  %v1241_v62 = vpack.c.bf16 %v1207_v3, %v1206_v9  ;;  %v4200_v49 = vld [vmem:[%s4646_s0 + $0x8] sm:$0xff]  }
 0x267   :  { %v1240_v40 = vpack.c.bf16 %v1205_v47, %v1204_v18  ;;  %3032 = vmatpush3.bf16.msra.mxu1 %v3288_v31 }
 0x268   :  { %v3418_v46 = vpop.eup %3417 }
 0x269   :  { %v3420_v11 = vpop.eup %3419  ;;  %v2524_v12 = vadd.f32 -1.0, %v3418_v46  ;;  %2961 = vmatprep.mubr.bf16.mxu0 %v1240_v40 }
 0x26a   :  { %v3422_v15 = vpop.eup %3421  ;;  %v2522_v51 = vadd.f32 -1.0, %v3420_v11 }
 0x26b   :  { %v3424_v16 = vpop.eup %3423  ;;  %v2525_v17 = vadd.f32 -1.0, %v3422_v15  ;;  %v1210_v32 = vsel %vm1082_vm12, %v4160_v53, %v2524_v12  ;;  %v4284_v53 = vld [vmem:[%s4646_s0 + $0x78] sm:$0xff]  }
 0x26c   :  { %v2523_v54 = vadd.f32 -1.0, %v3424_v16  ;;  %2962 = vmatmul.mubr.bf16.gmra.mrb[72].mxu0 %v1241_v62  ;;  %v1208_v7 = vsel %vm1080_vm14, %v4164_v4, %v2522_v51  ;;  %v4299_v4 = vld [vmem:[%s4645_s1 + $0xc] ss:$16 sps:$4 sm:$0xff]  }
 0x26d   :  { %v1211_v1 = vsel %vm1083_vm13, %v1051_v60, %v2525_v17  ;;  %3065 = vmatprep.subr.bf16.mxu1 %v4299_v4 }
 0x26e   :  { %v1209_v20 = vsel %vm1081_vm15, %v1049_v29, %v2523_v54  ;;  %v1243_v23 = vpack.c.bf16 %v1211_v1, %v1210_v32 }
 0x26f   :  { %v1242_v24 = vpack.c.bf16 %v1209_v20, %v1208_v7 }
 0x271   :  { %2965 = vmatprep.mubr.bf16.mxu0 %v1242_v24 }
 0x274   :  { %2966 = vmatmul.mubr.bf16.gmra.mrb[76].mxu0 %v1243_v23 }
 0x275   :  { %2985 = vmatprep.mubr.bf16.mxu0 %v4194_v25 }
 0x27c   :  { %2986 = vmatmul.mubr.bf16.vlgmr.msra.gmra.mrb[48].mxu0 %v4200_v49 }
 0x27d   :  { %2989 = vmatprep.mubr.bf16.mxu0 %v4206_v38 }
 0x284   :  { %2990 = vmatmul.mubr.bf16.gmra.mrb[52].mxu0 %v4212_v36 }
 0x285   :  { %2993 = vmatprep.mubr.bf16.mxu0 %v4218_v41 }
 0x28c   :  { %2994 = vmatmul.mubr.bf16.gmra.mrb[56].mxu0 %v4224_v44 }
 0x28d   :  { %2997 = vmatprep.mubr.bf16.mxu0 %v4230_v33 }
 0x294   :  { %2998 = vmatmul.mubr.bf16.gmra.mrb[60].mxu0 %v4236_v45 }
 0x295   :  { %3001 = vmatprep.mubr.bf16.mxu0 %v4242_v56 }
 0x29c   :  { %3002 = vmatmul.mubr.bf16.gmra.mrb[64].mxu0 %v4248_v48 }
 0x29d   :  { %3005 = vmatprep.mubr.bf16.mxu0 %v4254_v37 }
 0x2a4   :  { %3006 = vmatmul.mubr.bf16.gmra.mrb[68].mxu0 %v4260_v14 }
 0x2a5   :  { %3009 = vmatprep.mubr.bf16.mxu0 %v4266_v34 }
 0x2ac   :  { %3010 = vmatmul.mubr.bf16.gmra.mrb[72].mxu0 %v4272_v61 }
 0x2ad   :  { %3013 = vmatprep.mubr.bf16.mxu0 %v4278_v43 }
 0x2b4   :  { %3014 = vmatmul.mubr.bf16.gmra.mrb[76].mxu0 %v4284_v53 }
 0x34f   :  { %v2987_v5 = vpop.f32.mrb[48].mxu0 }
 0x350   :  { %v1689_v22 = vadd.f32 %v2987_v5, %v4305_v21  ;;  %v1552_v57 = vpop.f32.mrb[49].mxu0 }
 0x351   :  { %v1687_v60 = vadd.f32 %v4305_v21, %v1552_v57  ;;  %v2988_v8 = vpop.f32.mrb[50].mxu0 }
 0x352   :  { %v1755_v58 = vmul.f32 1.442695, %v1689_v22  ;;  %v1690_v29 = vadd.f32 %v2988_v8, %v4305_v21  ;;  %v1555_v59 = vpop.f32.mrb[51].mxu0  ;;  %vm1721_vm0 = vcmp.gt.f32.partialorder %v1689_v22, 0.0 }
 0x353   :  { %v1751_v0 = vmul.f32 1.442695, %v1687_v60  ;;  %v1688_v2 = vadd.f32 %v4305_v21, %v1555_v59  ;;  %vm1719_vm2 = vcmp.gt.f32.partialorder %v1687_v60, 0.0 }
 0x354   :  { %3425 = vpow2.f32 %v1755_v58  ;;  %v1757_v6 = vmul.f32 1.442695, %v1690_v29  ;;  %vm1722_vm1 = vcmp.gt.f32.partialorder %v1690_v29, 0.0 }
 0x355   :  { %3427 = vpow2.f32 %v1751_v0  ;;  %v1753_v39 = vmul.f32 1.442695, %v1688_v2  ;;  %vm1720_vm3 = vcmp.gt.f32.partialorder %v1688_v2, 0.0 }
 0x356   :  { %3429 = vpow2.f32 %v1757_v6 }
 0x357   :  { %3431 = vpow2.f32 %v1753_v39  ;;  %v2991_v50 = vpop.f32.mrb[52].mxu0 }
 0x358   :  { %v4312_v35 = vadd.f32 %v2991_v50, %v4305_v21  ;;  %v1568_v42 = vpop.f32.mrb[53].mxu0 }
 0x359   :  { %v4315_v55 = vadd.f32 %v4305_v21, %v1568_v42  ;;  %v2992_v10 = vpop.f32.mrb[54].mxu0  ;;  %v3290_v42 = vld [vmem:[%s4645_s1 + $0x2c] ss:$16 sps:$4 sm:$0xff]  }
 0x35a   :  { %v1763_v13 = vmul.f32 1.442695, %v4312_v35  ;;  %v4319_v27 = vadd.f32 %v2992_v10, %v4305_v21  ;;  %v1571_v52 = vpop.f32.mrb[55].mxu0  ;;  %vm1725_vm4 = vcmp.gt.f32.partialorder %v4312_v35, 0.0 }
 0x35b   :  { %v1759_v26 = vmul.f32 1.442695, %v4315_v55  ;;  %v4323_v28 = vadd.f32 %v4305_v21, %v1571_v52  ;;  %vm1723_vm5 = vcmp.gt.f32.partialorder %v4315_v55, 0.0 }
 0x35c   :  { %3433 = vpow2.f32 %v1763_v13  ;;  %v1765_v30 = vmul.f32 1.442695, %v4319_v27  ;;  %vm1726_vm7 = vcmp.gt.f32.partialorder %v4319_v27, 0.0 }
 0x35d   :  { %3435 = vpow2.f32 %v1759_v26  ;;  %v1761_v9 = vmul.f32 1.442695, %v4323_v28  ;;  %vm1724_vm6 = vcmp.gt.f32.partialorder %v4323_v28, 0.0 }
 0x35e   :  { %v3426_v3 = vpop.eup %3425  ;;  %3437 = vpow2.f32 %v1765_v30 }
 0x35f   :  { %v3428_v18 = vpop.eup %3427  ;;  %v2562_v47 = vadd.f32 -1.0, %v3426_v3  ;;  %3439 = vpow2.f32 %v1761_v9  ;;  %v2995_v62 = vpop.f32.mrb[56].mxu0 }
 0x360   :  { %v3430_v40 = vpop.eup %3429  ;;  %v4328_v46 = vadd.f32 %v2995_v62, %v4305_v21  ;;  %v1584_v11 = vpop.f32.mrb[57].mxu0  ;;  %v2560_v17 = vadd.f32 -1.0, %v3428_v18 }
 0x361   :  { %v3432_v12 = vpop.eup %3431  ;;  %v2563_v15 = vadd.f32 -1.0, %v3430_v40  ;;  %v4331_v51 = vadd.f32 %v4305_v21, %v1584_v11  ;;  %v2996_v16 = vpop.f32.mrb[58].mxu0  ;;  %v1849_v20 = vsel %vm1721_vm0, %v1689_v22, %v2562_v47 }
 0x362   :  { %v2561_v54 = vadd.f32 -1.0, %v3432_v12  ;;  %v1771_v32 = vmul.f32 1.442695, %v4328_v46  ;;  %v4335_v1 = vadd.f32 %v2996_v16, %v4305_v21  ;;  %v1587_v7 = vpop.f32.mrb[59].mxu0  ;;  %v1847_v8 = vsel %vm1719_vm2, %v1687_v60, %v2560_v17  ;;  %v3291_v12 = vld [vmem:[%s4645_s1 + $0x4c] ss:$16 sps:$4 sm:$0xff]  }
 0x363   :  { %v1850_v23 = vsel %vm1722_vm1, %v1690_v29, %v2563_v15  ;;  %v1767_v24 = vmul.f32 1.442695, %v4331_v51  ;;  %v4339_v19 = vadd.f32 %v4305_v21, %v1587_v7  ;;  %vm1729_vm8 = vcmp.gt.f32.partialorder %v4328_v46, 0.0 }
 0x364   :  { %v1896_v63 = vpack.c.bf16 %v1850_v23, %v1849_v20  ;;  %3441 = vpow2.f32 %v1771_v32  ;;  %v1773_v31 = vmul.f32 1.442695, %v4335_v1  ;;  %v1848_v58 = vsel %vm1720_vm3, %v1688_v2, %v2561_v54 }
 0x365   :  { %3443 = vpow2.f32 %v1767_v24  ;;  %v1769_v5 = vmul.f32 1.442695, %v4339_v19  ;;  %v1895_v59 = vpack.c.bf16 %v1848_v58, %v1847_v8  ;;  %vm1727_vm9 = vcmp.gt.f32.partialorder %v4331_v51, 0.0 }
 0x366   :  { %v3434_v57 = vpop.eup %3433  ;;  %3445 = vpow2.f32 %v1773_v31  ;;  %vm1728_vm10 = vcmp.gt.f32.partialorder %v4339_v19, 0.0  ;;  %vm1730_vm11 = vcmp.gt.f32.partialorder %v4335_v1, 0.0 }
 0x367   :  { %v3436_v22 = vpop.eup %3435  ;;  %3447 = vpow2.f32 %v1769_v5  ;;  %v2999_v29 = vpop.f32.mrb[60].mxu0  ;;  %v2566_v13 = vadd.f32 -1.0, %v3434_v57  ;;  %3033 = vmatprep.mubr.bf16.mxu1 %v1895_v59 }
 0x368   :  { %v3438_v0 = vpop.eup %3437  ;;  %v2564_v6 = vadd.f32 -1.0, %v3436_v22  ;;  %v4344_v39 = vadd.f32 %v2999_v29, %v4305_v21  ;;  %v1600_v50 = vpop.f32.mrb[61].mxu0  ;;  %3034 = vmatmul.mubr.bf16.vlgmr.msra.gmra.mrb[32].mxu1 %v1896_v63  ;;  %v3292_v63 = vld [vmem:[%s4645_s1 + $0x6c] ss:$16 sps:$4 sm:$0xff]  }
 0x369   :  { %v3440_v10 = vpop.eup %3439  ;;  %v4351_v60 = vadd.f32 %v4305_v21, %v1600_v50  ;;  %v3000_v2 = vpop.f32.mrb[62].mxu0  ;;  %v2567_v52 = vadd.f32 -1.0, %v3438_v0  ;;  %3066 = vmatpush3.bf16.msra.mxu1 %v4299_v4  ;;  %v1853_v17 = vsel %vm1725_vm4, %v4312_v35, %v2566_v13 }
 0x36a   :  { %v2565_v26 = vadd.f32 -1.0, %v3440_v10  ;;  %v1779_v30 = vmul.f32 1.442695, %v4344_v39  ;;  %v4355_v9 = vadd.f32 %v3000_v2, %v4305_v21  ;;  %v1603_v3 = vpop.f32.mrb[63].mxu0  ;;  %v1851_v40 = vsel %vm1723_vm5, %v4315_v55, %v2564_v6  ;;  %3067 = vmatprep.subr.bf16.mxu1 %v3290_v42  ;;  %v3293_v10 = vld [vmem:[%s4645_s1 + $0x8c] ss:$16 sps:$4 sm:$0xff]  }
 0x36b   :  { %v1775_v18 = vmul.f32 1.442695, %v4351_v60  ;;  %v4362_v47 = vadd.f32 %v4305_v21, %v1603_v3  ;;  %v1854_v55 = vsel %vm1726_vm7, %v4319_v27, %v2567_v52  ;;  %vm1733_vm12 = vcmp.gt.f32.partialorder %v4344_v39, 0.0 }
 0x36c   :  { %3449 = vpow2.f32 %v1779_v30  ;;  %v1781_v62 = vmul.f32 1.442695, %v4355_v9  ;;  %v1852_v11 = vsel %vm1724_vm6, %v4323_v28, %v2565_v26  ;;  %v1898_v32 = vpack.c.bf16 %v1854_v55, %v1853_v17 }
 0x36d   :  { %3451 = vpow2.f32 %v1775_v18  ;;  %v1777_v4 = vmul.f32 1.442695, %v4362_v47  ;;  %v1897_v15 = vpack.c.bf16 %v1852_v11, %v1851_v40  ;;  %3068 = vmatpush3.bf16.msra.mxu1 %v3290_v42  ;;  %vm1731_vm13 = vcmp.gt.f32.partialorder %v4351_v60, 0.0 }
 0x36e   :  { %v3442_v16 = vpop.eup %3441  ;;  %3453 = vpow2.f32 %v1781_v62  ;;  %3069 = vmatprep.subr.bf16.mxu1 %v3291_v12  ;;  %vm1732_vm14 = vcmp.gt.f32.partialorder %v4362_v47, 0.0  ;;  %vm1734_vm15 = vcmp.gt.f32.partialorder %v4355_v9, 0.0 }
 0x36f   :  { %v3444_v28 = vpop.eup %3443  ;;  %3455 = vpow2.f32 %v1777_v4  ;;  %v3003_v54 = vpop.f32.mrb[64].mxu0  ;;  %3037 = vmatprep.mubr.bf16.mxu1 %v1897_v15  ;;  %v2570_v27 = vadd.f32 -1.0, %v3442_v16 }
 0x370   :  { %v3446_v7 = vpop.eup %3445  ;;  %v2568_v20 = vadd.f32 -1.0, %v3444_v28  ;;  %v4377_v23 = vadd.f32 %v3003_v54, %v4305_v21  ;;  %v1616_v24 = vpop.f32.mrb[65].mxu0  ;;  %3038 = vmatmul.mubr.bf16.gmra.mrb[36].mxu1 %v1898_v32 }
 0x371   :  { %v3448_v35 = vpop.eup %3447  ;;  %v4384_v31 = vadd.f32 %v4305_v21, %v1616_v24  ;;  %v3004_v5 = vpop.f32.mrb[66].mxu0  ;;  %v2571_v57 = vadd.f32 -1.0, %v3446_v7  ;;  %3070 = vmatpush3.bf16.msra.mxu1 %v3291_v12  ;;  %v1857_v26 = vsel %vm1729_vm8, %v4328_v46, %v2570_v27  ;;  %v3294_v12 = vld [vmem:[%s4645_s1 + $0xac] ss:$16 sps:$4 sm:$0xff]  }
 0x372   :  { %v2569_v8 = vadd.f32 -1.0, %v3448_v35  ;;  %v1787_v58 = vmul.f32 1.442695, %v4377_v23  ;;  %v4388_v22 = vadd.f32 %v3004_v5, %v4305_v21  ;;  %v1619_v29 = vpop.f32.mrb[67].mxu0  ;;  %v1855_v50 = vsel %vm1727_vm9, %v4331_v51, %v2568_v20  ;;  %3071 = vmatprep.subr.bf16.mxu1 %v3292_v63  ;;  %v3295_v35 = vld [vmem:[%s4645_s1 + $0xcc] ss:$16 sps:$4 sm:$0xff]  }
 0x373   :  { %v1783_v59 = vmul.f32 1.442695, %v4384_v31  ;;  %v4394_v0 = vadd.f32 %v4305_v21, %v1619_v29  ;;  %v1858_v51 = vsel %vm1730_vm11, %v4335_v1, %v2571_v57  ;;  %vm1737_vm0 = vcmp.gt.f32.partialorder %v4377_v23, 0.0 }
 0x374   :  { %3457 = vpow2.f32 %v1787_v58  ;;  %v1789_v6 = vmul.f32 1.442695, %v4388_v22  ;;  %v1856_v42 = vsel %vm1728_vm10, %v4339_v19, %v2569_v8  ;;  %v1900_v3 = vpack.c.bf16 %v1858_v51, %v1857_v26 }
 0x375   :  { %3459 = vpow2.f32 %v1783_v59  ;;  %v1785_v13 = vmul.f32 1.442695, %v4394_v0  ;;  %v1899_v2 = vpack.c.bf16 %v1856_v42, %v1855_v50  ;;  %3072 = vmatpush3.bf16.msra.mxu1 %v3292_v63  ;;  %vm1735_vm1 = vcmp.gt.f32.partialorder %v4384_v31, 0.0 }
 0x376   :  { %v3450_v52 = vpop.eup %3449  ;;  %3461 = vpow2.f32 %v1789_v6  ;;  %3073 = vmatprep.subr.bf16.mxu1 %v3293_v10  ;;  %vm1736_vm2 = vcmp.gt.f32.partialorder %v4394_v0, 0.0  ;;  %vm1738_vm3 = vcmp.gt.f32.partialorder %v4388_v22, 0.0 }
 0x377   :  { %v3452_v19 = vpop.eup %3451  ;;  %3463 = vpow2.f32 %v1785_v13  ;;  %v3007_v30 = vpop.f32.mrb[68].mxu0  ;;  %3041 = vmatprep.mubr.bf16.mxu1 %v1899_v2  ;;  %v2574_v1 = vadd.f32 -1.0, %v3450_v52 }
 0x378   :  { %v3454_v18 = vpop.eup %3453  ;;  %v2572_v62 = vadd.f32 -1.0, %v3452_v19  ;;  %v4409_v40 = vadd.f32 %v3007_v30, %v4305_v21  ;;  %v1632_v11 = vpop.f32.mrb[69].mxu0  ;;  %3042 = vmatmul.mubr.bf16.gmra.mrb[40].mxu1 %v1900_v3 }
 0x379   :  { %v3456_v46 = vpop.eup %3455  ;;  %v4416_v4 = vadd.f32 %v4305_v21, %v1632_v11  ;;  %v3008_v15 = vpop.f32.mrb[70].mxu0  ;;  %v2575_v16 = vadd.f32 -1.0, %v3454_v18  ;;  %3074 = vmatpush3.bf16.msra.mxu1 %v3293_v10  ;;  %v1861_v8 = vsel %vm1733_vm12, %v4344_v39, %v2574_v1  ;;  %v3296_v10 = vld [vmem:[%s4645_s1 + $0xec] ss:$16 sps:$4 sm:$0xff]  }
 0x37a   :  { %v2573_v17 = vadd.f32 -1.0, %v3456_v46  ;;  %v1795_v55 = vmul.f32 1.442695, %v4409_v40  ;;  %v4420_v28 = vadd.f32 %v3008_v15, %v4305_v21  ;;  %v1635_v54 = vpop.f32.mrb[71].mxu0  ;;  %v1859_v24 = vsel %vm1731_vm13, %v4351_v60, %v2572_v62  ;;  %3075 = vmatprep.subr.bf16.mxu1 %v3294_v12 }
 0x37b   :  { %v1791_v32 = vmul.f32 1.442695, %v4416_v4  ;;  %v4426_v7 = vadd.f32 %v4305_v21, %v1635_v54  ;;  %v1862_v60 = vsel %vm1734_vm15, %v4355_v9, %v2575_v16  ;;  %vm1741_vm4 = vcmp.gt.f32.partialorder %v4409_v40, 0.0 }
 0x37c   :  { %3465 = vpow2.f32 %v1795_v55  ;;  %v1797_v20 = vmul.f32 1.442695, %v4420_v28  ;;  %v1860_v63 = vsel %vm1732_vm14, %v4362_v47, %v2573_v17  ;;  %v1902_v29 = vpack.c.bf16 %v1862_v60, %v1861_v8 }
 0x37d   :  { %3467 = vpow2.f32 %v1791_v32  ;;  %v1793_v27 = vmul.f32 1.442695, %v4426_v7  ;;  %v1901_v5 = vpack.c.bf16 %v1860_v63, %v1859_v24  ;;  %3076 = vmatpush3.bf16.msra.mxu1 %v3294_v12  ;;  %vm1739_vm5 = vcmp.gt.f32.partialorder %v4416_v4, 0.0 }
 0x37e   :  { %v3458_v57 = vpop.eup %3457  ;;  %3469 = vpow2.f32 %v1797_v20  ;;  %3077 = vmatprep.subr.bf16.mxu1 %v3295_v35  ;;  %vm1740_vm6 = vcmp.gt.f32.partialorder %v4426_v7, 0.0  ;;  %vm1742_vm7 = vcmp.gt.f32.partialorder %v4420_v28, 0.0 }
 0x37f   :  { %v3460_v47 = vpop.eup %3459  ;;  %3471 = vpow2.f32 %v1793_v27  ;;  %v3011_v58 = vpop.f32.mrb[72].mxu0  ;;  %3045 = vmatprep.mubr.bf16.mxu1 %v1901_v5  ;;  %v2578_v9 = vadd.f32 -1.0, %v3458_v57 }
 0x380   :  { %v3462_v59 = vpop.eup %3461  ;;  %v2576_v6 = vadd.f32 -1.0, %v3460_v47  ;;  %v4441_v50 = vadd.f32 %v3011_v58, %v4305_v21  ;;  %v1648_v42 = vpop.f32.mrb[73].mxu0  ;;  %3046 = vmatmul.mubr.bf16.gmra.mrb[44].mxu1 %v1902_v29 }
 0x381   :  { %v3464_v39 = vpop.eup %3463  ;;  %v4448_v13 = vadd.f32 %v4305_v21, %v1648_v42  ;;  %v3012_v2 = vpop.f32.mrb[74].mxu0  ;;  %v2579_v52 = vadd.f32 -1.0, %v3462_v59  ;;  %3078 = vmatpush3.bf16.msra.mxu1 %v3295_v35  ;;  %v1865_v16 = vsel %vm1737_vm0, %v4377_v23, %v2578_v9 }
 0x382   :  { %v2577_v26 = vadd.f32 -1.0, %v3464_v39  ;;  %v1803_v51 = vmul.f32 1.442695, %v4441_v50  ;;  %v4452_v19 = vadd.f32 %v3012_v2, %v4305_v21  ;;  %v1651_v30 = vpop.f32.mrb[75].mxu0  ;;  %v1863_v11 = vsel %vm1735_vm1, %v4384_v31, %v2576_v6  ;;  %3079 = vmatprep.subr.bf16.mxu1 %v3296_v10 }
 0x383   :  { %v1799_v3 = vmul.f32 1.442695, %v4448_v13  ;;  %v4458_v18 = vadd.f32 %v4305_v21, %v1651_v30  ;;  %v1866_v17 = vsel %vm1738_vm3, %v4388_v22, %v2579_v52  ;;  %vm1745_vm8 = vcmp.gt.f32.partialorder %v4441_v50, 0.0 }
 0x384   :  { %3473 = vpow2.f32 %v1803_v51  ;;  %v1805_v62 = vmul.f32 1.442695, %v4452_v19  ;;  %v1864_v12 = vsel %vm1736_vm2, %v4394_v0, %v2577_v26  ;;  %v1904_v0 = vpack.c.bf16 %v1866_v17, %v1865_v16 }
 0x385   :  { %3475 = vpow2.f32 %v1799_v3  ;;  %v1801_v46 = vmul.f32 1.442695, %v4458_v18  ;;  %v1903_v1 = vpack.c.bf16 %v1864_v12, %v1863_v11  ;;  %3080 = vmatpush3.bf16.msra.mxu1 %v3296_v10  ;;  %vm1746_vm9 = vcmp.gt.f32.partialorder %v4452_v19, 0.0 }
 0x386   :  { %v3466_v15 = vpop.eup %3465  ;;  %3477 = vpow2.f32 %v1805_v62  ;;  %vm1743_vm10 = vcmp.gt.f32.partialorder %v4448_v13, 0.0  ;;  %vm1744_vm11 = vcmp.gt.f32.partialorder %v4458_v18, 0.0 }
 0x387   :  { %v3468_v55 = vpop.eup %3467  ;;  %3479 = vpow2.f32 %v1801_v46  ;;  %v3015_v31 = vpop.f32.mrb[76].mxu0  ;;  %3049 = vmatprep.mubr.bf16.mxu1 %v1903_v1  ;;  %v2582_v35 = vadd.f32 -1.0, %v3466_v15 }
 0x388   :  { %v3470_v54 = vpop.eup %3469  ;;  %v2580_v32 = vadd.f32 -1.0, %v3468_v55  ;;  %v4470_v20 = vadd.f32 %v3015_v31, %v4305_v21  ;;  %v1664_v24 = vpop.f32.mrb[77].mxu0  ;;  %3050 = vmatmul.mubr.bf16.gmra.mrb[48].mxu1 %v1904_v0 }
 0x389   :  { %v3472_v63 = vpop.eup %3471  ;;  %v1715_v23 = vadd.f32 %v4305_v21, %v1664_v24  ;;  %v3016_v27 = vpop.f32.mrb[78].mxu0  ;;  %v2583_v22 = vadd.f32 -1.0, %v3470_v54  ;;  %v1869_v9 = vsel %vm1741_vm4, %v4409_v40, %v2582_v35 }
 0x38a   :  { %v2581_v5 = vadd.f32 -1.0, %v3472_v63  ;;  %v1811_v57 = vmul.f32 1.442695, %v4470_v20  ;;  %v1718_v8 = vadd.f32 %v3016_v27, %v4305_v21  ;;  %v1667_v60 = vpop.f32.mrb[79].mxu0  ;;  %v1867_v59 = vsel %vm1739_vm5, %v4416_v4, %v2580_v32 }
 0x38b   :  { %v1807_v47 = vmul.f32 1.442695, %v1715_v23  ;;  %v1716_v58 = vadd.f32 %v4305_v21, %v1667_v60  ;;  %v1870_v2 = vsel %vm1742_vm7, %v4420_v28, %v2583_v22  ;;  %vm1749_vm12 = vcmp.gt.f32.partialorder %v4470_v20, 0.0 }
 0x38c   :  { %3481 = vpow2.f32 %v1811_v57  ;;  %v1813_v29 = vmul.f32 1.442695, %v1718_v8  ;;  %v1868_v6 = vsel %vm1740_vm6, %v4426_v7, %v2581_v5  ;;  %v1906_v4 = vpack.c.bf16 %v1870_v2, %v1869_v9 }
 0x38d   :  { %3483 = vpow2.f32 %v1807_v47  ;;  %v1809_v42 = vmul.f32 1.442695, %v1716_v58  ;;  %v1905_v10 = vpack.c.bf16 %v1868_v6, %v1867_v59  ;;  %vm1750_vm13 = vcmp.gt.f32.partialorder %v1718_v8, 0.0 }
 0x38e   :  { %v3474_v39 = vpop.eup %3473  ;;  %3485 = vpow2.f32 %v1813_v29  ;;  %vm1747_vm14 = vcmp.gt.f32.partialorder %v1715_v23, 0.0  ;;  %vm1748_vm15 = vcmp.gt.f32.partialorder %v1716_v58, 0.0 }
 0x38f   :  { %v3476_v21 = vpop.eup %3475  ;;  %v2586_v52 = vadd.f32 -1.0, %v3474_v39  ;;  %3487 = vpow2.f32 %v1809_v42  ;;  %3053 = vmatprep.mubr.bf16.mxu1 %v1905_v10 }
 0x390   :  { %v3478_v26 = vpop.eup %3477  ;;  %v2584_v7 = vadd.f32 -1.0, %v3476_v21  ;;  %3054 = vmatmul.mubr.bf16.gmra.mrb[52].mxu1 %v1906_v4 }
 0x391   :  { %v3480_v51 = vpop.eup %3479  ;;  %v2587_v30 = vadd.f32 -1.0, %v3478_v26  ;;  %v1873_v40 = vsel %vm1745_vm8, %v4441_v50, %v2586_v52 }
 0x392   :  { %v2585_v3 = vadd.f32 -1.0, %v3480_v51  ;;  %v1871_v62 = vsel %vm1743_vm10, %v4448_v13, %v2584_v7 }
 0x393   :  { %v1874_v28 = vsel %vm1746_vm9, %v4452_v19, %v2587_v30 }
 0x394   :  { %v1872_v11 = vsel %vm1744_vm11, %v4458_v18, %v2585_v3  ;;  %v1908_v12 = vpack.c.bf16 %v1874_v28, %v1873_v40 }
 0x395   :  { %v1907_v46 = vpack.c.bf16 %v1872_v11, %v1871_v62 }
 0x396   :  { %v3482_v1 = vpop.eup %3481 }
 0x397   :  { %v3484_v15 = vpop.eup %3483  ;;  %v2590_v16 = vadd.f32 -1.0, %v3482_v1  ;;  %3057 = vmatprep.mubr.bf16.mxu1 %v1907_v46 }
 0x398   :  { %v3486_v17 = vpop.eup %3485  ;;  %v2588_v55 = vadd.f32 -1.0, %v3484_v15  ;;  %3058 = vmatmul.mubr.bf16.gmra.mrb[56].mxu1 %v1908_v12 }
 0x399   :  { %v3488_v31 = vpop.eup %3487  ;;  %v2591_v0 = vadd.f32 -1.0, %v3486_v17  ;;  %v1877_v13 = vsel %vm1749_vm12, %v4470_v20, %v2590_v16 }
 0x39a   :  { %v2589_v50 = vadd.f32 -1.0, %v3488_v31  ;;  %v1875_v18 = vsel %vm1747_vm14, %v1715_v23, %v2588_v55 }
 0x39b   :  { %v1878_v19 = vsel %vm1750_vm13, %v1718_v8, %v2591_v0 }
 0x39c   :  { %v1876_v54 = vsel %vm1748_vm15, %v1716_v58, %v2589_v50  ;;  %v1910_v32 = vpack.c.bf16 %v1878_v19, %v1877_v13 }
 0x39d   :  { %v1909_v24 = vpack.c.bf16 %v1876_v54, %v1875_v18 }
 0x39f   :  { %3061 = vmatprep.mubr.bf16.mxu1 %v1909_v24 }
 0x3a0   :  { %3062 = vmatmul.mubr.bf16.gmra.mrb[60].mxu1 %v1910_v32 }
 0x3a1   :  { %3081 = vmatprep.mubr.bf16.mxu1 %v4194_v25  ;;  %v4515_v25 = vld [vmem:[%s4651_s6] ss:$0 sm:$0xff] }
 0x3a8   :  { %3082 = vmatmul.mubr.bf16.vlgmr.msra.gmra.mrb[32].mxu1 %v4200_v49 }
 0x3a9   :  { %3085 = vmatprep.mubr.bf16.mxu1 %v4206_v38 }
 0x3b0   :  { %3086 = vmatmul.mubr.bf16.gmra.mrb[36].mxu1 %v4212_v36 }
 0x3b1   :  { %3089 = vmatprep.mubr.bf16.mxu1 %v4218_v41 }
 0x3b8   :  { %3090 = vmatmul.mubr.bf16.gmra.mrb[40].mxu1 %v4224_v44 }
 0x3b9   :  { %3093 = vmatprep.mubr.bf16.mxu1 %v4230_v33 }
 0x3c0   :  { %3094 = vmatmul.mubr.bf16.gmra.mrb[44].mxu1 %v4236_v45 }
 0x3c1   :  { %3097 = vmatprep.mubr.bf16.mxu1 %v4242_v56 }
 0x3c8   :  { %3098 = vmatmul.mubr.bf16.gmra.mrb[48].mxu1 %v4248_v48 }
 0x3c9   :  { %3101 = vmatprep.mubr.bf16.mxu1 %v4254_v37 }
 0x3d0   :  { %3102 = vmatmul.mubr.bf16.gmra.mrb[52].mxu1 %v4260_v14 }
 0x3d1   :  { %3105 = vmatprep.mubr.bf16.mxu1 %v4266_v34 }
 0x3d8   :  { %3106 = vmatmul.mubr.bf16.gmra.mrb[56].mxu1 %v4272_v61 }
 0x3d9   :  { %3109 = vmatprep.mubr.bf16.mxu1 %v4278_v43 }
 0x3e0   :  { %3110 = vmatmul.mubr.bf16.gmra.mrb[60].mxu1 %v4284_v53 }
 0x47b   :  { %v3083_v49 = vpop.f32.mrb[32].mxu1 }
 0x47c   :  { %v2354_v38 = vadd.f32 %v3083_v49, %v4515_v25  ;;  %v2218_v36 = vpop.f32.mrb[33].mxu1 }
 0x47d   :  { %v2352_v41 = vadd.f32 %v4515_v25, %v2218_v36  ;;  %v3084_v44 = vpop.f32.mrb[34].mxu1 }
 0x47e   :  { %2386 = vst [vmem:[%s4652_s7 + $0x10] sm:$0xff] %v2354_v38  ;;  %v2355_v33 = vadd.f32 %v3084_v44, %v4515_v25  ;;  %v2221_v45 = vpop.f32.mrb[35].mxu1 }
 0x47f   :  { %2384 = vst [vmem:[%s4652_s7] sm:$0xff] %v2352_v41  ;;  %v2353_v56 = vadd.f32 %v4515_v25, %v2221_v45 }
 0x480   :  { %2387 = vst [vmem:[%s4652_s7 + $0x18] sm:$0xff] %v2355_v33 }
 0x481   :  { %2385 = vst [vmem:[%s4652_s7 + $0x8] sm:$0xff] %v2353_v56 }
 0x483   :  { %v3087_v48 = vpop.f32.mrb[36].mxu1 }
 0x484   :  { %v2358_v37 = vadd.f32 %v3087_v48, %v4515_v25  ;;  %v2234_v14 = vpop.f32.mrb[37].mxu1 }
 0x485   :  { %v2356_v34 = vadd.f32 %v4515_v25, %v2234_v14  ;;  %v3088_v61 = vpop.f32.mrb[38].mxu1 }
 0x486   :  { %2390 = vst [vmem:[%s4652_s7 + $0x30] sm:$0xff] %v2358_v37  ;;  %v2359_v43 = vadd.f32 %v3088_v61, %v4515_v25  ;;  %v2237_v53 = vpop.f32.mrb[39].mxu1 }
 0x487   :  { %2388 = vst [vmem:[%s4652_s7 + $0x20] sm:$0xff] %v2356_v34  ;;  %v2357_v20 = vadd.f32 %v4515_v25, %v2237_v53 }
 0x488   :  { %2391 = vst [vmem:[%s4652_s7 + $0x38] sm:$0xff] %v2359_v43 }
 0x489   :  { %2389 = vst [vmem:[%s4652_s7 + $0x28] sm:$0xff] %v2357_v20 }
 0x48b   :  { %v3091_v63 = vpop.f32.mrb[40].mxu1 }
 0x48c   :  { %v2362_v35 = vadd.f32 %v3091_v63, %v4515_v25  ;;  %v2250_v23 = vpop.f32.mrb[41].mxu1 }
 0x48d   :  { %v2360_v27 = vadd.f32 %v4515_v25, %v2250_v23  ;;  %v3092_v22 = vpop.f32.mrb[42].mxu1 }
 0x48e   :  { %2394 = vst [vmem:[%s4652_s7 + $0x50] sm:$0xff] %v2362_v35  ;;  %v2363_v5 = vadd.f32 %v3092_v22, %v4515_v25  ;;  %v2253_v57 = vpop.f32.mrb[43].mxu1 }
 0x48f   :  { %2392 = vst [vmem:[%s4652_s7 + $0x40] sm:$0xff] %v2360_v27  ;;  %v2361_v8 = vadd.f32 %v4515_v25, %v2253_v57 }
 0x490   :  { %2395 = vst [vmem:[%s4652_s7 + $0x58] sm:$0xff] %v2363_v5 }
 0x491   :  { %2393 = vst [vmem:[%s4652_s7 + $0x48] sm:$0xff] %v2361_v8 }
 0x493   :  { %v3095_v60 = vpop.f32.mrb[44].mxu1 }
 0x494   :  { %v2366_v47 = vadd.f32 %v3095_v60, %v4515_v25  ;;  %v2266_v58 = vpop.f32.mrb[45].mxu1 }
 0x495   :  { %v2364_v29 = vadd.f32 %v4515_v25, %v2266_v58  ;;  %v3096_v59 = vpop.f32.mrb[46].mxu1 }
 0x496   :  { %2398 = vst [vmem:[%s4652_s7 + $0x70] sm:$0xff] %v2366_v47  ;;  %v2367_v6 = vadd.f32 %v3096_v59, %v4515_v25  ;;  %v2269_v42 = vpop.f32.mrb[47].mxu1 }
 0x497   :  { %2396 = vst [vmem:[%s4652_s7 + $0x60] sm:$0xff] %v2364_v29  ;;  %v2365_v10 = vadd.f32 %v4515_v25, %v2269_v42 }
 0x498   :  { %2399 = vst [vmem:[%s4652_s7 + $0x78] sm:$0xff] %v2367_v6 }
 0x499   :  { %2397 = vst [vmem:[%s4652_s7 + $0x68] sm:$0xff] %v2365_v10 }
 0x49b   :  { %v3099_v39 = vpop.f32.mrb[48].mxu1 }
 0x49c   :  { %v2370_v9 = vadd.f32 %v3099_v39, %v4515_v25  ;;  %v2282_v2 = vpop.f32.mrb[49].mxu1 }
 0x49d   :  { %v2368_v21 = vadd.f32 %v4515_v25, %v2282_v2  ;;  %v3100_v52 = vpop.f32.mrb[50].mxu1 }
 0x49e   :  { %2402 = vst [vmem:[%s4652_s7 + $0x90] sm:$0xff] %v2370_v9  ;;  %v2371_v4 = vadd.f32 %v3100_v52, %v4515_v25  ;;  %v2285_v26 = vpop.f32.mrb[51].mxu1 }
 0x49f   :  { %2400 = vst [vmem:[%s4652_s7 + $0x80] sm:$0xff] %v2368_v21  ;;  %v2369_v7 = vadd.f32 %v4515_v25, %v2285_v26 }
 0x4a0   :  { %2403 = vst [vmem:[%s4652_s7 + $0x98] sm:$0xff] %v2371_v4 }
 0x4a1   :  { %2401 = vst [vmem:[%s4652_s7 + $0x88] sm:$0xff] %v2369_v7 }
 0x4a3   :  { %v3103_v51 = vpop.f32.mrb[52].mxu1 }
 0x4a4   :  { %v2374_v30 = vadd.f32 %v3103_v51, %v4515_v25  ;;  %v2298_v3 = vpop.f32.mrb[53].mxu1 }
 0x4a5   :  { %v2372_v40 = vadd.f32 %v4515_v25, %v2298_v3  ;;  %v3104_v28 = vpop.f32.mrb[54].mxu1 }
 0x4a6   :  { %2406 = vst [vmem:[%s4652_s7 + $0xb0] sm:$0xff] %v2374_v30  ;;  %v2375_v62 = vadd.f32 %v3104_v28, %v4515_v25  ;;  %v2301_v11 = vpop.f32.mrb[55].mxu1 }
 0x4a7   :  { %2404 = vst [vmem:[%s4652_s7 + $0xa0] sm:$0xff] %v2372_v40  ;;  %v2373_v12 = vadd.f32 %v4515_v25, %v2301_v11 }
 0x4a8   :  { %2407 = vst [vmem:[%s4652_s7 + $0xb8] sm:$0xff] %v2375_v62 }
 0x4a9   :  { %2405 = vst [vmem:[%s4652_s7 + $0xa8] sm:$0xff] %v2373_v12 }
 0x4ab   :  { %v3107_v46 = vpop.f32.mrb[56].mxu1 }
 0x4ac   :  { %v2378_v1 = vadd.f32 %v3107_v46, %v4515_v25  ;;  %v2314_v15 = vpop.f32.mrb[57].mxu1 }
 0x4ad   :  { %v2376_v16 = vadd.f32 %v4515_v25, %v2314_v15  ;;  %v3108_v17 = vpop.f32.mrb[58].mxu1 }
 0x4ae   :  { %2410 = vst [vmem:[%s4652_s7 + $0xd0] sm:$0xff] %v2378_v1  ;;  %v2379_v55 = vadd.f32 %v3108_v17, %v4515_v25  ;;  %v2317_v31 = vpop.f32.mrb[59].mxu1 }
 0x4af   :  { %2408 = vst [vmem:[%s4652_s7 + $0xc0] sm:$0xff] %v2376_v16  ;;  %v2377_v0 = vadd.f32 %v4515_v25, %v2317_v31 }
 0x4b0   :  { %2411 = vst [vmem:[%s4652_s7 + $0xd8] sm:$0xff] %v2379_v55 }
 0x4b1   :  { %2409 = vst [vmem:[%s4652_s7 + $0xc8] sm:$0xff] %v2377_v0 }
 0x4b3   :  { %v3111_v50 = vpop.f32.mrb[60].mxu1 }
 0x4b4   :  { %v2382_v13 = vadd.f32 %v3111_v50, %v4515_v25  ;;  %v2330_v19 = vpop.f32.mrb[61].mxu1 }
 0x4b5   :  { %v2380_v18 = vadd.f32 %v4515_v25, %v2330_v19  ;;  %v3112_v54 = vpop.f32.mrb[62].mxu1 }
 0x4b6   :  { %2414 = vst [vmem:[%s4652_s7 + $0xf0] sm:$0xff] %v2382_v13  ;;  %v2383_v32 = vadd.f32 %v3112_v54, %v4515_v25  ;;  %v2333_v24 = vpop.f32.mrb[63].mxu1 }
 0x4b7   :  { %2412 = vst [vmem:[%s4652_s7 + $0xe0] sm:$0xff] %v2380_v18  ;;  %v2381_v49 = vadd.f32 %v4515_v25, %v2333_v24 }
 0x4b8   :  { %2415 = vst [vmem:[%s4652_s7 + $0xf8] sm:$0xff] %v2383_v32 }
 0x4b9   :  { %2413 = vst [vmem:[%s4652_s7 + $0xe8] sm:$0xff] %v2381_v49 }

</bundles_post_ra>
